<compile_context>
chip_gen: v6e
topology: v6e:2x2x1
jax: 0.10.0
libtpu: 0.0.40
codegen_flags: <defaults>
</compile_context>

<pallas_src>
import functools

import jax
import jax.numpy as jnp
import numpy as np
from jax.experimental import pallas as pl
from jax.experimental.pallas import tpu as pltpu


# ----------------------------------------------------------------------------
# Pallas kernel: grid = (batch_tile, t_chunk); recurrence runs inside.
# ----------------------------------------------------------------------------
def _deep_rnn_kernel(x_ref, w1_ref, b1_ref, wih_ref, whh_ref, bih_ref, bhh_ref,
                     w2_ref, b2_ref, h0_ref,
                     out_ref, hlast_ref,
                     gi_ref, hseq_ref, hcarry_ref,
                     *, TC, TB, H, GP):
    f32 = jnp.float32
    c = pl.program_id(1)
    Din = x_ref.shape[-1]
    DP = w2_ref.shape[-1]

    # Re-load the initial hidden state at the start of each batch tile's T sweep.
    @pl.when(c == 0)
    def _():
        hcarry_ref[...] = h0_ref[...]

    # ---- Phase A: hoisted off the recurrence, batched over the whole chunk ---
    # gi = relu(x @ W1 + b1) @ W_ih + b_ih for all TC*TB rows of this chunk.
    x_rows = x_ref[...].reshape(TC * TB, Din)
    x_lin = jnp.maximum(
        jnp.dot(x_rows, w1_ref[...], preferred_element_type=f32) + b1_ref[...], 0.0)
    gi_ref[...] = (jnp.dot(x_lin, wih_ref[...], preferred_element_type=f32)
                   + bih_ref[...]).reshape(TC, TB, 3 * GP)

    # ---- Phase B: serial GRU recurrence (only h-dependent work per step) -----
    whh = whh_ref[...]                                     # hoisted loop invariant
    bhh = jnp.broadcast_to(bhh_ref[...], (TB, 3 * GP))     # hoisted: no per-step broadcast

    def step(t, h_prev):
        gi = gi_ref[t]                                     # (TB, 3*GP), sublane-aligned row block
        gh = jnp.dot(h_prev, whh, preferred_element_type=f32) + bhh
        # Gate slices start at multiples of GP (a multiple of 128) -> lane aligned.
        r = jax.nn.sigmoid(gi[:, 0:H] + gh[:, 0:H])
        z = jax.nn.sigmoid(gi[:, GP:GP + H] + gh[:, GP:GP + H])
        n = jnp.tanh(gi[:, 2 * GP:2 * GP + H] + r * gh[:, 2 * GP:2 * GP + H])
        h_new = (1.0 - z) * n + z * h_prev
        hseq_ref[t] = jnp.maximum(h_new, 0.0)              # ReLU fused into the store
        return h_new

    # Partial unroll (bounded live ranges; avoids the 64-deep full unroll spills).
    U = next(u for u in (8, 4, 2, 1) if TC % u == 0)

    def outer(i, h):
        base = i * U
        for k in range(U):
            h = step(base + k, h)
        return h

    h = jax.lax.fori_loop(0, TC // U, outer, hcarry_ref[...])
    hcarry_ref[...] = h
    hlast_ref[...] = h.astype(hlast_ref.dtype)

    # ---- Phase C: hoisted output head, lane-dense (Dout padded to 128) store --
    hs = hseq_ref[...].reshape(TC * TB, H)
    y = jnp.dot(hs, w2_ref[...], preferred_element_type=f32) + b2_ref[...]
    out_ref[...] = jnp.tanh(y).reshape(TC, TB, DP).astype(out_ref.dtype)


# ----------------------------------------------------------------------------
# Parameters (torch-like init, weights stored pre-transposed for x @ W)
# ----------------------------------------------------------------------------
def init_params(key, input_dim, linear_dim, recurrent_dim, output_dim):
    ks = jax.random.split(key, 10)

    def u(k, shape, fan):
        bound = 1.0 / np.sqrt(fan)
        return jax.random.uniform(k, shape, jnp.float32, -bound, bound)

    H = recurrent_dim
    return {
        # linear1: torch weight (L, Din) -> stored transposed (Din, L)
        "w1": u(ks[0], (input_dim, linear_dim), input_dim),
        "b1": u(ks[1], (1, linear_dim), input_dim),
        # GRU: torch weight_ih (3H, L) -> stored transposed (L, 3H); gate order r,z,n
        "w_ih": u(ks[2], (linear_dim, 3 * H), H),
        "w_hh": u(ks[3], (H, 3 * H), H),
        "b_ih": u(ks[4], (1, 3 * H), H),
        "b_hh": u(ks[5], (1, 3 * H), H),
        # linear2: torch weight (Dout, H) -> stored transposed (H, Dout)
        "w2": u(ks[6], (H, output_dim), H),
        "b2": u(ks[7], (1, output_dim), H),
    }


def _pad_gate_cols(w, H, GP):
    """(..., 3H) -> (..., 3*GP): gate g's H columns placed at lane offset g*GP."""
    if GP == H:
        return w
    parts = []
    for g in range(3):
        blk = w[..., g * H:(g + 1) * H]
        parts.append(jnp.pad(blk, [(0, 0)] * (w.ndim - 1) + [(0, GP - H)]))
    return jnp.concatenate(parts, axis=-1)


def _round_up(v, m):
    return -(-v // m) * m


def _choose_t_chunk(T, TB, Din, H, GP, DP, budget_bytes=24 << 20):
    """Largest divisor of T whose per-chunk footprint (gi + hseq scratch plus
    double-buffered x / out blocks) fits the budget; falls back to 1."""
    def chunk_bytes(tc):
        rows = tc * TB
        return 4 * (rows * (3 * GP + H) + 2 * rows * Din + 2 * rows * DP)

    best = 1
    for cand in range(T, 0, -1):
        if T % cand == 0:
            best = cand
            if chunk_bytes(cand) <= budget_bytes:
                break
    return best


# ----------------------------------------------------------------------------
# Wrapper: pad batch / gate-stride / output lanes, set up the 2-D grid.
# ----------------------------------------------------------------------------
@jax.jit
def deep_rnn_policy(params, x, hidden_state=None):
    """Forward pass matching DeepRNNPolicy.forward (time-major, batch_first=False)."""
    if x.ndim == 2:                      # (B, Din) -> (1, B, Din), like torch
        x = x[None]
    T, B, Din = x.shape
    H = params["w_hh"].shape[0]
    L = params["w1"].shape[1]
    Dout = params["w2"].shape[1]

    # Torch builds the zero state from x.shape[0] (only valid when T == B for
    # 3-D input); we use the true batch dimension instead.
    if hidden_state is None:
        hidden_state = jnp.zeros((1, B, H), jnp.float32)
    h0 = hidden_state.reshape(B, H).astype(jnp.float32)

    # Batch tiling: pad to sublane multiples; split into two tiles when the
    # batch is big enough so the "parallel" grid axis feeds v7x's second TC.
    NB = 2 if B > 8 else 1
    Bp = _round_up(B, 8 * NB)
    TB = Bp // NB

    GP = _round_up(H, 128)       # per-gate column stride (lane-aligned slices in the loop)
    DP = _round_up(Dout, 128)    # lane-dense output columns

    # T-chunking: bound VMEM scratch / pipelined blocks per chunk.
    TC = _choose_t_chunk(T, TB, Din, H, GP, DP)
    NTC = T // TC

    x_p = x.astype(jnp.float32)
    if Bp != B:
        x_p = jnp.pad(x_p, ((0, 0), (0, Bp - B), (0, 0)))
        h0 = jnp.pad(h0, ((0, Bp - B), (0, 0)))

    wih_p = _pad_gate_cols(params["w_ih"], H, GP)
    whh_p = _pad_gate_cols(params["w_hh"], H, GP)
    bih_p = _pad_gate_cols(params["b_ih"], H, GP)
    bhh_p = _pad_gate_cols(params["b_hh"], H, GP)
    w2_p = jnp.pad(params["w2"], ((0, 0), (0, DP - Dout)))
    b2_p = jnp.pad(params["b2"], ((0, 0), (0, DP - Dout)))

    # Explicit scoped-VMEM limit: double-buffered blocks + weights + scratch
    # with ~50% headroom for compiler temporaries, clamped to [16, 96] MiB.
    weight_elems = (Din * L + L + L * 3 * GP + H * 3 * GP + 2 * 3 * GP + H * DP + DP)
    block_elems = (2 * TC * TB * Din          # x block (double buffered)
                   + 2 * TC * TB * DP         # out block (double buffered)
                   + 4 * TB * H               # h0 + h_last blocks
                   + TC * TB * (3 * GP + H)   # gi + hseq scratch
                   + TB * H)                  # carried hidden state scratch
    vmem_limit = int(min(96 << 20,
                         max(16 << 20, int(1.5 * 4 * (2 * weight_elems + block_elems)))))

    def full(a):
        return pl.BlockSpec(a.shape, lambda b, c: (0,) * a.ndim)

    out_p, h_last = pl.pallas_call(
        functools.partial(_deep_rnn_kernel, TC=TC, TB=TB, H=H, GP=GP),
        out_shape=(
            jax.ShapeDtypeStruct((T, Bp, DP), jnp.float32),
            jax.ShapeDtypeStruct((Bp, H), jnp.float32),
        ),
        grid_spec=pltpu.PrefetchScalarGridSpec(
            num_scalar_prefetch=0,
            grid=(NB, NTC),
            in_specs=[
                pl.BlockSpec((TC, TB, Din), lambda b, c: (c, b, 0)),   # x chunk
                full(params["w1"]), full(params["b1"]),
                full(wih_p), full(whh_p), full(bih_p), full(bhh_p),
                full(w2_p), full(b2_p),
                pl.BlockSpec((TB, H), lambda b, c: (b, 0)),            # h0 tile
            ],
            out_specs=[
                pl.BlockSpec((TC, TB, DP), lambda b, c: (c, b, 0)),    # out chunk
                pl.BlockSpec((TB, H), lambda b, c: (b, 0)),            # final hidden
            ],
            scratch_shapes=[
                pltpu.VMEM((TC, TB, 3 * GP), jnp.float32),   # gi for this chunk
                pltpu.VMEM((TC, TB, H), jnp.float32),        # relu(h_t) for this chunk
                pltpu.VMEM((TB, H), jnp.float32),            # carried hidden state
            ]),
        compiler_params=pltpu.CompilerParams(
            dimension_semantics=("parallel", "arbitrary"),
            vmem_limit_bytes=vmem_limit),
    )(x_p, params["w1"], params["b1"], wih_p, whh_p, bih_p, bhh_p,
      w2_p, b2_p, h0)

    out = out_p[:, :B, :Dout]
    new_hidden = h_last[:B][None]                          # (1, B, H)
    if out.shape[0] == 1:                                  # torch squeezes when T == 1
        out = out[0]
    return out, new_hidden


# ----------------------------------------------------------------------------
# Pure-JAX reference (same math) for a sanity check
# ----------------------------------------------------------------------------
def _reference(params, x, h0):
    H = params["w_hh"].shape[0]

    def step(h, xt):
        xl = jnp.maximum(xt @ params["w1"] + params["b1"], 0.0)
        gi = xl @ params["w_ih"] + params["b_ih"]
        gh = h @ params["w_hh"] + params["b_hh"]
        r = jax.nn.sigmoid(gi[:, :H] + gh[:, :H])
        z = jax.nn.sigmoid(gi[:, H:2 * H] + gh[:, H:2 * H])
        n = jnp.tanh(gi[:, 2 * H:] + r * gh[:, 2 * H:])
        hn = (1.0 - z) * n + z * h
        y = jnp.tanh(jnp.maximum(hn, 0.0) @ params["w2"] + params["b2"])
        return hn, y

    h_final, ys = jax.lax.scan(step, h0, x)
    return ys, h_final[None]


if __name__ == "__main__":
    key = jax.random.PRNGKey(0)
    T, B = 8, 4
    input_dim, linear_dim, recurrent_dim, output_dim = 16, 32, 32, 8

    kp, kx = jax.random.split(key)
    params = init_params(kp, input_dim, linear_dim, recurrent_dim, output_dim)
    x = jax.random.normal(kx, (T, B, input_dim), jnp.float32)

    out, new_hidden = deep_rnn_policy(params, x, hidden_state=None)
    out = jax.block_until_ready(out)
    new_hidden = jax.block_until_ready(new_hidden)

    ref_out, ref_h = _reference(params, x, jnp.zeros((B, recurrent_dim), jnp.float32))
    assert out.shape == (T, B, output_dim), out.shape
    assert new_hidden.shape == (1, B, recurrent_dim), new_hidden.shape
    np.testing.assert_allclose(np.asarray(out), np.asarray(ref_out), atol=1e-2, rtol=1e-2)
    np.testing.assert_allclose(np.asarray(new_hidden), np.asarray(ref_h), atol=1e-2, rtol=1e-2)

    print("KERNEL_OK")
</pallas_src>

<mosaic_0001>
module attributes {stable_mosaic.version = 11 : i64} {
  func.func @_deep_rnn_kernel(%arg0: i32, %arg1: i32, %arg2: memref<8x8x16xf32, #tpu.memory_space<vmem>>, %arg3: memref<16x32xf32, #tpu.memory_space<vmem>>, %arg4: memref<1x32xf32, #tpu.memory_space<vmem>>, %arg5: memref<32x384xf32, #tpu.memory_space<vmem>>, %arg6: memref<32x384xf32, #tpu.memory_space<vmem>>, %arg7: memref<1x384xf32, #tpu.memory_space<vmem>>, %arg8: memref<1x384xf32, #tpu.memory_space<vmem>>, %arg9: memref<32x128xf32, #tpu.memory_space<vmem>>, %arg10: memref<1x128xf32, #tpu.memory_space<vmem>>, %arg11: memref<8x32xf32, #tpu.memory_space<vmem>>, %arg12: memref<8x8x128xf32, #tpu.memory_space<vmem>>, %arg13: memref<8x32xf32, #tpu.memory_space<vmem>>, %arg14: memref<8x8x384xf32, #tpu.memory_space<vmem>>, %arg15: memref<8x8x32xf32, #tpu.memory_space<vmem>>, %arg16: memref<8x32xf32, #tpu.memory_space<vmem>>) attributes {dimension_semantics = [#tpu.dimension_semantics<parallel>, #tpu.dimension_semantics<arbitrary>], iteration_bounds = array<i64: 1, 1>, scalar_prefetch = 0 : i64, scratch_operands = 3 : i64, tpu.core_type = #tpu.core_type<tc>, window_params = [{transform_indices = @transform_0, window_bounds = array<i64: 8, 8, 16>}, {pipeline_mode = #tpu.pipeline_mode<synchronous>, transform_indices = @transform_1, window_bounds = array<i64: 16, 32>}, {pipeline_mode = #tpu.pipeline_mode<synchronous>, transform_indices = @transform_2, window_bounds = array<i64: 1, 32>}, {pipeline_mode = #tpu.pipeline_mode<synchronous>, transform_indices = @transform_3, window_bounds = array<i64: 32, 384>}, {pipeline_mode = #tpu.pipeline_mode<synchronous>, transform_indices = @transform_4, window_bounds = array<i64: 32, 384>}, {pipeline_mode = #tpu.pipeline_mode<synchronous>, transform_indices = @transform_5, window_bounds = array<i64: 1, 384>}, {pipeline_mode = #tpu.pipeline_mode<synchronous>, transform_indices = @transform_6, window_bounds = array<i64: 1, 384>}, {pipeline_mode = #tpu.pipeline_mode<synchronous>, transform_indices = @transform_7, window_bounds = array<i64: 32, 128>}, {pipeline_mode = #tpu.pipeline_mode<synchronous>, transform_indices = @transform_8, window_bounds = array<i64: 1, 128>}, {transform_indices = @transform_9, window_bounds = array<i64: 8, 32>}, {transform_indices = @transform_10, window_bounds = array<i64: 8, 8, 128>}, {transform_indices = @transform_11, window_bounds = array<i64: 8, 32>}]} {
    %c0_i32 = arith.constant 0 : i32
    %0 = arith.cmpi eq, %arg1, %c0_i32 : i32
    %1 = arith.extui %0 : i1 to i32
    %c0_i32_0 = arith.constant 0 : i32
    %2 = arith.cmpi ne, %1, %c0_i32_0 : i32
    scf.if %2 {
      %c0_112 = arith.constant 0 : index
      %c0_113 = arith.constant 0 : index
      %341 = vector.load %arg11[%c0_112, %c0_113] : memref<8x32xf32, #tpu.memory_space<vmem>>, vector<8x32xf32>
      %c0_114 = arith.constant 0 : index
      %c0_115 = arith.constant 0 : index
      %342 = vector.load %arg16[%c0_114, %c0_115] : memref<8x32xf32, #tpu.memory_space<vmem>>, vector<8x32xf32>
      tpu.vector_store %arg16[%c0_114, %c0_115], %341 {strides = array<i32>} : memref<8x32xf32, #tpu.memory_space<vmem>>, vector<8x32xf32>,
    } else {
    }
    %c0 = arith.constant 0 : index
    %c0_1 = arith.constant 0 : index
    %c0_2 = arith.constant 0 : index
    %3 = vector.load %arg2[%c0, %c0_1, %c0_2] : memref<8x8x16xf32, #tpu.memory_space<vmem>>, vector<8x8x16xf32>
    %4 = vector.shape_cast %3 : vector<8x8x16xf32> to vector<64x16xf32>
    %c0_3 = arith.constant 0 : index
    %c0_4 = arith.constant 0 : index
    %5 = vector.load %arg3[%c0_3, %c0_4] : memref<16x32xf32, #tpu.memory_space<vmem>>, vector<16x32xf32>
    %cst = arith.constant dense<0.000000e+00> : vector<64x32xf32>
    %6 = tpu.matmul %4, %5, %cst {dimension_numbers = #tpu.dot_dimension_numbers<[1], [0], [0], [1], [0, 0, 1, 1], [], []>} : vector<64x16xf32>, vector<16x32xf32>, vector<64x32xf32> -> vector<64x32xf32>
    %c0_5 = arith.constant 0 : index
    %c0_6 = arith.constant 0 : index
    %7 = vector.load %arg4[%c0_5, %c0_6] : memref<1x32xf32, #tpu.memory_space<vmem>>, vector<1x32xf32>
    %8 = vector.broadcast %7 : vector<1x32xf32> to vector<64x32xf32>
    %9 = arith.addf %6, %8 : vector<64x32xf32>
    %cst_7 = arith.constant 0.000000e+00 : f32
    %10 = vector.broadcast %cst_7 : f32 to vector<64x32xf32>
    %11 = arith.maximumf %9, %10 : vector<64x32xf32>
    %c0_8 = arith.constant 0 : index
    %c0_9 = arith.constant 0 : index
    %12 = vector.load %arg5[%c0_8, %c0_9] : memref<32x384xf32, #tpu.memory_space<vmem>>, vector<32x384xf32>
    %cst_10 = arith.constant dense<0.000000e+00> : vector<64x384xf32>
    %13 = tpu.matmul %11, %12, %cst_10 {dimension_numbers = #tpu.dot_dimension_numbers<[1], [0], [0], [1], [0, 0, 1, 1], [], []>} : vector<64x32xf32>, vector<32x384xf32>, vector<64x384xf32> -> vector<64x384xf32>
    %c0_11 = arith.constant 0 : index
    %c0_12 = arith.constant 0 : index
    %14 = vector.load %arg7[%c0_11, %c0_12] : memref<1x384xf32, #tpu.memory_space<vmem>>, vector<1x384xf32>
    %15 = vector.broadcast %14 : vector<1x384xf32> to vector<64x384xf32>
    %16 = arith.addf %13, %15 : vector<64x384xf32>
    %17 = vector.shape_cast %16 : vector<64x384xf32> to vector<8x8x384xf32>
    %c0_13 = arith.constant 0 : index
    %c0_14 = arith.constant 0 : index
    %c0_15 = arith.constant 0 : index
    %18 = vector.load %arg14[%c0_13, %c0_14, %c0_15] : memref<8x8x384xf32, #tpu.memory_space<vmem>>, vector<8x8x384xf32>
    tpu.vector_store %arg14[%c0_13, %c0_14, %c0_15], %17 {strides = array<i32>} : memref<8x8x384xf32, #tpu.memory_space<vmem>>, vector<8x8x384xf32>,
    %c0_16 = arith.constant 0 : index
    %c0_17 = arith.constant 0 : index
    %19 = vector.load %arg6[%c0_16, %c0_17] : memref<32x384xf32, #tpu.memory_space<vmem>>, vector<32x384xf32>
    %c0_18 = arith.constant 0 : index
    %c0_19 = arith.constant 0 : index
    %20 = vector.load %arg8[%c0_18, %c0_19] : memref<1x384xf32, #tpu.memory_space<vmem>>, vector<1x384xf32>
    %21 = vector.shape_cast %20 : vector<1x384xf32> to vector<1x384xf32>
    %22 = vector.broadcast %21 : vector<1x384xf32> to vector<8x384xf32>
    %c0_20 = arith.constant 0 : index
    %c0_21 = arith.constant 0 : index
    %23 = vector.load %arg16[%c0_20, %c0_21] : memref<8x32xf32, #tpu.memory_space<vmem>>, vector<8x32xf32>
    %c0_i32_22 = arith.constant 0 : i32
    %c8_i32 = arith.constant 8 : i32
    %24 = arith.muli %c0_i32_22, %c8_i32 : i32
    %c0_i32_23 = arith.constant 0 : i32
    %25 = arith.addi %24, %c0_i32_23 : i32
    %26 = arith.index_cast %25 : i32 to index
    %c0_24 = arith.constant 0 : index
    %c0_25 = arith.constant 0 : index
    %27 = vector.load %arg14[%26, %c0_24, %c0_25] : memref<8x8x384xf32, #tpu.memory_space<vmem>>, vector<1x8x384xf32>
    %28 = vector.shape_cast %27 : vector<1x8x384xf32> to vector<8x384xf32>
    %cst_26 = arith.constant dense<0.000000e+00> : vector<8x384xf32>
    %29 = tpu.matmul %23, %19, %cst_26 {dimension_numbers = #tpu.dot_dimension_numbers<[1], [0], [0], [1], [0, 0, 1, 1], [], []>} : vector<8x32xf32>, vector<32x384xf32>, vector<8x384xf32> -> vector<8x384xf32>
    %30 = arith.addf %29, %22 : vector<8x384xf32>
    %31 = vector.extract_strided_slice %28 {offsets = [0, 0], sizes = [8, 32], strides = [1, 1]} : vector<8x384xf32> to vector<8x32xf32>
    %32 = vector.extract_strided_slice %30 {offsets = [0, 0], sizes = [8, 32], strides = [1, 1]} : vector<8x384xf32> to vector<8x32xf32>
    %33 = arith.addf %31, %32 : vector<8x32xf32>
    %34 = arith.negf %33 : vector<8x32xf32>
    %35 = math.exp %34 : vector<8x32xf32>
    %cst_27 = arith.constant 1.000000e+00 : f32
    %36 = vector.broadcast %cst_27 : f32 to vector<8x32xf32>
    %37 = arith.addf %36, %35 : vector<8x32xf32>
    %38 = arith.divf %36, %37 : vector<8x32xf32>
    %39 = vector.extract_strided_slice %28 {offsets = [0, 128], sizes = [8, 32], strides = [1, 1]} : vector<8x384xf32> to vector<8x32xf32>
    %40 = vector.extract_strided_slice %30 {offsets = [0, 128], sizes = [8, 32], strides = [1, 1]} : vector<8x384xf32> to vector<8x32xf32>
    %41 = arith.addf %39, %40 : vector<8x32xf32>
    %42 = arith.negf %41 : vector<8x32xf32>
    %43 = math.exp %42 : vector<8x32xf32>
    %cst_28 = arith.constant 1.000000e+00 : f32
    %44 = vector.broadcast %cst_28 : f32 to vector<8x32xf32>
    %45 = arith.addf %44, %43 : vector<8x32xf32>
    %46 = arith.divf %44, %45 : vector<8x32xf32>
    %47 = vector.extract_strided_slice %28 {offsets = [0, 256], sizes = [8, 32], strides = [1, 1]} : vector<8x384xf32> to vector<8x32xf32>
    %48 = vector.extract_strided_slice %30 {offsets = [0, 256], sizes = [8, 32], strides = [1, 1]} : vector<8x384xf32> to vector<8x32xf32>
    %49 = arith.mulf %38, %48 : vector<8x32xf32>
    %50 = arith.addf %47, %49 : vector<8x32xf32>
    %51 = math.tanh %50 : vector<8x32xf32>
    %cst_29 = arith.constant 1.000000e+00 : f32
    %52 = vector.broadcast %cst_29 : f32 to vector<8x32xf32>
    %53 = arith.subf %52, %46 : vector<8x32xf32>
    %54 = arith.mulf %53, %51 : vector<8x32xf32>
    %55 = arith.mulf %46, %23 : vector<8x32xf32>
    %56 = arith.addf %54, %55 : vector<8x32xf32>
    %cst_30 = arith.constant 0.000000e+00 : f32
    %57 = vector.broadcast %cst_30 : f32 to vector<8x32xf32>
    %58 = arith.maximumf %56, %57 : vector<8x32xf32>
    %59 = arith.index_cast %25 : i32 to index
    %c0_31 = arith.constant 0 : index
    %c0_32 = arith.constant 0 : index
    %60 = vector.load %arg15[%59, %c0_31, %c0_32] : memref<8x8x32xf32, #tpu.memory_space<vmem>>, vector<1x8x32xf32>
    %61 = vector.shape_cast %60 : vector<1x8x32xf32> to vector<8x32xf32>
    %62 = vector.shape_cast %58 : vector<8x32xf32> to vector<1x8x32xf32>
    tpu.vector_store %arg15[%59, %c0_31, %c0_32], %62 {strides = array<i32>} : memref<8x8x32xf32, #tpu.memory_space<vmem>>, vector<1x8x32xf32>,
    %c1_i32 = arith.constant 1 : i32
    %63 = arith.addi %24, %c1_i32 : i32
    %64 = arith.index_cast %63 : i32 to index
    %c0_33 = arith.constant 0 : index
    %c0_34 = arith.constant 0 : index
    %65 = vector.load %arg14[%64, %c0_33, %c0_34] : memref<8x8x384xf32, #tpu.memory_space<vmem>>, vector<1x8x384xf32>
    %66 = vector.shape_cast %65 : vector<1x8x384xf32> to vector<8x384xf32>
    %cst_35 = arith.constant dense<0.000000e+00> : vector<8x384xf32>
    %67 = tpu.matmul %56, %19, %cst_35 {dimension_numbers = #tpu.dot_dimension_numbers<[1], [0], [0], [1], [0, 0, 1, 1], [], []>} : vector<8x32xf32>, vector<32x384xf32>, vector<8x384xf32> -> vector<8x384xf32>
    %68 = arith.addf %67, %22 : vector<8x384xf32>
    %69 = vector.extract_strided_slice %66 {offsets = [0, 0], sizes = [8, 32], strides = [1, 1]} : vector<8x384xf32> to vector<8x32xf32>
    %70 = vector.extract_strided_slice %68 {offsets = [0, 0], sizes = [8, 32], strides = [1, 1]} : vector<8x384xf32> to vector<8x32xf32>
    %71 = arith.addf %69, %70 : vector<8x32xf32>
    %72 = arith.negf %71 : vector<8x32xf32>
    %73 = math.exp %72 : vector<8x32xf32>
    %cst_36 = arith.constant 1.000000e+00 : f32
    %74 = vector.broadcast %cst_36 : f32 to vector<8x32xf32>
    %75 = arith.addf %74, %73 : vector<8x32xf32>
    %76 = arith.divf %74, %75 : vector<8x32xf32>
    %77 = vector.extract_strided_slice %66 {offsets = [0, 128], sizes = [8, 32], strides = [1, 1]} : vector<8x384xf32> to vector<8x32xf32>
    %78 = vector.extract_strided_slice %68 {offsets = [0, 128], sizes = [8, 32], strides = [1, 1]} : vector<8x384xf32> to vector<8x32xf32>
    %79 = arith.addf %77, %78 : vector<8x32xf32>
    %80 = arith.negf %79 : vector<8x32xf32>
    %81 = math.exp %80 : vector<8x32xf32>
    %cst_37 = arith.constant 1.000000e+00 : f32
    %82 = vector.broadcast %cst_37 : f32 to vector<8x32xf32>
    %83 = arith.addf %82, %81 : vector<8x32xf32>
    %84 = arith.divf %82, %83 : vector<8x32xf32>
    %85 = vector.extract_strided_slice %66 {offsets = [0, 256], sizes = [8, 32], strides = [1, 1]} : vector<8x384xf32> to vector<8x32xf32>
    %86 = vector.extract_strided_slice %68 {offsets = [0, 256], sizes = [8, 32], strides = [1, 1]} : vector<8x384xf32> to vector<8x32xf32>
    %87 = arith.mulf %76, %86 : vector<8x32xf32>
    %88 = arith.addf %85, %87 : vector<8x32xf32>
    %89 = math.tanh %88 : vector<8x32xf32>
    %cst_38 = arith.constant 1.000000e+00 : f32
    %90 = vector.broadcast %cst_38 : f32 to vector<8x32xf32>
    %91 = arith.subf %90, %84 : vector<8x32xf32>
    %92 = arith.mulf %91, %89 : vector<8x32xf32>
    %93 = arith.mulf %84, %56 : vector<8x32xf32>
    %94 = arith.addf %92, %93 : vector<8x32xf32>
    %cst_39 = arith.constant 0.000000e+00 : f32
    %95 = vector.broadcast %cst_39 : f32 to vector<8x32xf32>
    %96 = arith.maximumf %94, %95 : vector<8x32xf32>
    %97 = arith.index_cast %63 : i32 to index
    %c0_40 = arith.constant 0 : index
    %c0_41 = arith.constant 0 : index
    %98 = vector.load %arg15[%97, %c0_40, %c0_41] : memref<8x8x32xf32, #tpu.memory_space<vmem>>, vector<1x8x32xf32>
    %99 = vector.shape_cast %98 : vector<1x8x32xf32> to vector<8x32xf32>
    %100 = vector.shape_cast %96 : vector<8x32xf32> to vector<1x8x32xf32>
    tpu.vector_store %arg15[%97, %c0_40, %c0_41], %100 {strides = array<i32>} : memref<8x8x32xf32, #tpu.memory_space<vmem>>, vector<1x8x32xf32>,
    %c2_i32 = arith.constant 2 : i32
    %101 = arith.addi %24, %c2_i32 : i32
    %102 = arith.index_cast %101 : i32 to index
    %c0_42 = arith.constant 0 : index
    %c0_43 = arith.constant 0 : index
    %103 = vector.load %arg14[%102, %c0_42, %c0_43] : memref<8x8x384xf32, #tpu.memory_space<vmem>>, vector<1x8x384xf32>
    %104 = vector.shape_cast %103 : vector<1x8x384xf32> to vector<8x384xf32>
    %cst_44 = arith.constant dense<0.000000e+00> : vector<8x384xf32>
    %105 = tpu.matmul %94, %19, %cst_44 {dimension_numbers = #tpu.dot_dimension_numbers<[1], [0], [0], [1], [0, 0, 1, 1], [], []>} : vector<8x32xf32>, vector<32x384xf32>, vector<8x384xf32> -> vector<8x384xf32>
    %106 = arith.addf %105, %22 : vector<8x384xf32>
    %107 = vector.extract_strided_slice %104 {offsets = [0, 0], sizes = [8, 32], strides = [1, 1]} : vector<8x384xf32> to vector<8x32xf32>
    %108 = vector.extract_strided_slice %106 {offsets = [0, 0], sizes = [8, 32], strides = [1, 1]} : vector<8x384xf32> to vector<8x32xf32>
    %109 = arith.addf %107, %108 : vector<8x32xf32>
    %110 = arith.negf %109 : vector<8x32xf32>
    %111 = math.exp %110 : vector<8x32xf32>
    %cst_45 = arith.constant 1.000000e+00 : f32
    %112 = vector.broadcast %cst_45 : f32 to vector<8x32xf32>
    %113 = arith.addf %112, %111 : vector<8x32xf32>
    %114 = arith.divf %112, %113 : vector<8x32xf32>
    %115 = vector.extract_strided_slice %104 {offsets = [0, 128], sizes = [8, 32], strides = [1, 1]} : vector<8x384xf32> to vector<8x32xf32>
    %116 = vector.extract_strided_slice %106 {offsets = [0, 128], sizes = [8, 32], strides = [1, 1]} : vector<8x384xf32> to vector<8x32xf32>
    %117 = arith.addf %115, %116 : vector<8x32xf32>
    %118 = arith.negf %117 : vector<8x32xf32>
    %119 = math.exp %118 : vector<8x32xf32>
    %cst_46 = arith.constant 1.000000e+00 : f32
    %120 = vector.broadcast %cst_46 : f32 to vector<8x32xf32>
    %121 = arith.addf %120, %119 : vector<8x32xf32>
    %122 = arith.divf %120, %121 : vector<8x32xf32>
    %123 = vector.extract_strided_slice %104 {offsets = [0, 256], sizes = [8, 32], strides = [1, 1]} : vector<8x384xf32> to vector<8x32xf32>
    %124 = vector.extract_strided_slice %106 {offsets = [0, 256], sizes = [8, 32], strides = [1, 1]} : vector<8x384xf32> to vector<8x32xf32>
    %125 = arith.mulf %114, %124 : vector<8x32xf32>
    %126 = arith.addf %123, %125 : vector<8x32xf32>
    %127 = math.tanh %126 : vector<8x32xf32>
    %cst_47 = arith.constant 1.000000e+00 : f32
    %128 = vector.broadcast %cst_47 : f32 to vector<8x32xf32>
    %129 = arith.subf %128, %122 : vector<8x32xf32>
    %130 = arith.mulf %129, %127 : vector<8x32xf32>
    %131 = arith.mulf %122, %94 : vector<8x32xf32>
    %132 = arith.addf %130, %131 : vector<8x32xf32>
    %cst_48 = arith.constant 0.000000e+00 : f32
    %133 = vector.broadcast %cst_48 : f32 to vector<8x32xf32>
    %134 = arith.maximumf %132, %133 : vector<8x32xf32>
    %135 = arith.index_cast %101 : i32 to index
    %c0_49 = arith.constant 0 : index
    %c0_50 = arith.constant 0 : index
    %136 = vector.load %arg15[%135, %c0_49, %c0_50] : memref<8x8x32xf32, #tpu.memory_space<vmem>>, vector<1x8x32xf32>
    %137 = vector.shape_cast %136 : vector<1x8x32xf32> to vector<8x32xf32>
    %138 = vector.shape_cast %134 : vector<8x32xf32> to vector<1x8x32xf32>
    tpu.vector_store %arg15[%135, %c0_49, %c0_50], %138 {strides = array<i32>} : memref<8x8x32xf32, #tpu.memory_space<vmem>>, vector<1x8x32xf32>,
    %c3_i32 = arith.constant 3 : i32
    %139 = arith.addi %24, %c3_i32 : i32
    %140 = arith.index_cast %139 : i32 to index
    %c0_51 = arith.constant 0 : index
    %c0_52 = arith.constant 0 : index
    %141 = vector.load %arg14[%140, %c0_51, %c0_52] : memref<8x8x384xf32, #tpu.memory_space<vmem>>, vector<1x8x384xf32>
    %142 = vector.shape_cast %141 : vector<1x8x384xf32> to vector<8x384xf32>
    %cst_53 = arith.constant dense<0.000000e+00> : vector<8x384xf32>
    %143 = tpu.matmul %132, %19, %cst_53 {dimension_numbers = #tpu.dot_dimension_numbers<[1], [0], [0], [1], [0, 0, 1, 1], [], []>} : vector<8x32xf32>, vector<32x384xf32>, vector<8x384xf32> -> vector<8x384xf32>
    %144 = arith.addf %143, %22 : vector<8x384xf32>
    %145 = vector.extract_strided_slice %142 {offsets = [0, 0], sizes = [8, 32], strides = [1, 1]} : vector<8x384xf32> to vector<8x32xf32>
    %146 = vector.extract_strided_slice %144 {offsets = [0, 0], sizes = [8, 32], strides = [1, 1]} : vector<8x384xf32> to vector<8x32xf32>
    %147 = arith.addf %145, %146 : vector<8x32xf32>
    %148 = arith.negf %147 : vector<8x32xf32>
    %149 = math.exp %148 : vector<8x32xf32>
    %cst_54 = arith.constant 1.000000e+00 : f32
    %150 = vector.broadcast %cst_54 : f32 to vector<8x32xf32>
    %151 = arith.addf %150, %149 : vector<8x32xf32>
    %152 = arith.divf %150, %151 : vector<8x32xf32>
    %153 = vector.extract_strided_slice %142 {offsets = [0, 128], sizes = [8, 32], strides = [1, 1]} : vector<8x384xf32> to vector<8x32xf32>
    %154 = vector.extract_strided_slice %144 {offsets = [0, 128], sizes = [8, 32], strides = [1, 1]} : vector<8x384xf32> to vector<8x32xf32>
    %155 = arith.addf %153, %154 : vector<8x32xf32>
    %156 = arith.negf %155 : vector<8x32xf32>
    %157 = math.exp %156 : vector<8x32xf32>
    %cst_55 = arith.constant 1.000000e+00 : f32
    %158 = vector.broadcast %cst_55 : f32 to vector<8x32xf32>
    %159 = arith.addf %158, %157 : vector<8x32xf32>
    %160 = arith.divf %158, %159 : vector<8x32xf32>
    %161 = vector.extract_strided_slice %142 {offsets = [0, 256], sizes = [8, 32], strides = [1, 1]} : vector<8x384xf32> to vector<8x32xf32>
    %162 = vector.extract_strided_slice %144 {offsets = [0, 256], sizes = [8, 32], strides = [1, 1]} : vector<8x384xf32> to vector<8x32xf32>
    %163 = arith.mulf %152, %162 : vector<8x32xf32>
    %164 = arith.addf %161, %163 : vector<8x32xf32>
    %165 = math.tanh %164 : vector<8x32xf32>
    %cst_56 = arith.constant 1.000000e+00 : f32
    %166 = vector.broadcast %cst_56 : f32 to vector<8x32xf32>
    %167 = arith.subf %166, %160 : vector<8x32xf32>
    %168 = arith.mulf %167, %165 : vector<8x32xf32>
    %169 = arith.mulf %160, %132 : vector<8x32xf32>
    %170 = arith.addf %168, %169 : vector<8x32xf32>
    %cst_57 = arith.constant 0.000000e+00 : f32
    %171 = vector.broadcast %cst_57 : f32 to vector<8x32xf32>
    %172 = arith.maximumf %170, %171 : vector<8x32xf32>
    %173 = arith.index_cast %139 : i32 to index
    %c0_58 = arith.constant 0 : index
    %c0_59 = arith.constant 0 : index
    %174 = vector.load %arg15[%173, %c0_58, %c0_59] : memref<8x8x32xf32, #tpu.memory_space<vmem>>, vector<1x8x32xf32>
    %175 = vector.shape_cast %174 : vector<1x8x32xf32> to vector<8x32xf32>
    %176 = vector.shape_cast %172 : vector<8x32xf32> to vector<1x8x32xf32>
    tpu.vector_store %arg15[%173, %c0_58, %c0_59], %176 {strides = array<i32>} : memref<8x8x32xf32, #tpu.memory_space<vmem>>, vector<1x8x32xf32>,
    %c4_i32 = arith.constant 4 : i32
    %177 = arith.addi %24, %c4_i32 : i32
    %178 = arith.index_cast %177 : i32 to index
    %c0_60 = arith.constant 0 : index
    %c0_61 = arith.constant 0 : index
    %179 = vector.load %arg14[%178, %c0_60, %c0_61] : memref<8x8x384xf32, #tpu.memory_space<vmem>>, vector<1x8x384xf32>
    %180 = vector.shape_cast %179 : vector<1x8x384xf32> to vector<8x384xf32>
    %cst_62 = arith.constant dense<0.000000e+00> : vector<8x384xf32>
    %181 = tpu.matmul %170, %19, %cst_62 {dimension_numbers = #tpu.dot_dimension_numbers<[1], [0], [0], [1], [0, 0, 1, 1], [], []>} : vector<8x32xf32>, vector<32x384xf32>, vector<8x384xf32> -> vector<8x384xf32>
    %182 = arith.addf %181, %22 : vector<8x384xf32>
    %183 = vector.extract_strided_slice %180 {offsets = [0, 0], sizes = [8, 32], strides = [1, 1]} : vector<8x384xf32> to vector<8x32xf32>
    %184 = vector.extract_strided_slice %182 {offsets = [0, 0], sizes = [8, 32], strides = [1, 1]} : vector<8x384xf32> to vector<8x32xf32>
    %185 = arith.addf %183, %184 : vector<8x32xf32>
    %186 = arith.negf %185 : vector<8x32xf32>
    %187 = math.exp %186 : vector<8x32xf32>
    %cst_63 = arith.constant 1.000000e+00 : f32
    %188 = vector.broadcast %cst_63 : f32 to vector<8x32xf32>
    %189 = arith.addf %188, %187 : vector<8x32xf32>
    %190 = arith.divf %188, %189 : vector<8x32xf32>
    %191 = vector.extract_strided_slice %180 {offsets = [0, 128], sizes = [8, 32], strides = [1, 1]} : vector<8x384xf32> to vector<8x32xf32>
    %192 = vector.extract_strided_slice %182 {offsets = [0, 128], sizes = [8, 32], strides = [1, 1]} : vector<8x384xf32> to vector<8x32xf32>
    %193 = arith.addf %191, %192 : vector<8x32xf32>
    %194 = arith.negf %193 : vector<8x32xf32>
    %195 = math.exp %194 : vector<8x32xf32>
    %cst_64 = arith.constant 1.000000e+00 : f32
    %196 = vector.broadcast %cst_64 : f32 to vector<8x32xf32>
    %197 = arith.addf %196, %195 : vector<8x32xf32>
    %198 = arith.divf %196, %197 : vector<8x32xf32>
    %199 = vector.extract_strided_slice %180 {offsets = [0, 256], sizes = [8, 32], strides = [1, 1]} : vector<8x384xf32> to vector<8x32xf32>
    %200 = vector.extract_strided_slice %182 {offsets = [0, 256], sizes = [8, 32], strides = [1, 1]} : vector<8x384xf32> to vector<8x32xf32>
    %201 = arith.mulf %190, %200 : vector<8x32xf32>
    %202 = arith.addf %199, %201 : vector<8x32xf32>
    %203 = math.tanh %202 : vector<8x32xf32>
    %cst_65 = arith.constant 1.000000e+00 : f32
    %204 = vector.broadcast %cst_65 : f32 to vector<8x32xf32>
    %205 = arith.subf %204, %198 : vector<8x32xf32>
    %206 = arith.mulf %205, %203 : vector<8x32xf32>
    %207 = arith.mulf %198, %170 : vector<8x32xf32>
    %208 = arith.addf %206, %207 : vector<8x32xf32>
    %cst_66 = arith.constant 0.000000e+00 : f32
    %209 = vector.broadcast %cst_66 : f32 to vector<8x32xf32>
    %210 = arith.maximumf %208, %209 : vector<8x32xf32>
    %211 = arith.index_cast %177 : i32 to index
    %c0_67 = arith.constant 0 : index
    %c0_68 = arith.constant 0 : index
    %212 = vector.load %arg15[%211, %c0_67, %c0_68] : memref<8x8x32xf32, #tpu.memory_space<vmem>>, vector<1x8x32xf32>
    %213 = vector.shape_cast %212 : vector<1x8x32xf32> to vector<8x32xf32>
    %214 = vector.shape_cast %210 : vector<8x32xf32> to vector<1x8x32xf32>
    tpu.vector_store %arg15[%211, %c0_67, %c0_68], %214 {strides = array<i32>} : memref<8x8x32xf32, #tpu.memory_space<vmem>>, vector<1x8x32xf32>,
    %c5_i32 = arith.constant 5 : i32
    %215 = arith.addi %24, %c5_i32 : i32
    %216 = arith.index_cast %215 : i32 to index
    %c0_69 = arith.constant 0 : index
    %c0_70 = arith.constant 0 : index
    %217 = vector.load %arg14[%216, %c0_69, %c0_70] : memref<8x8x384xf32, #tpu.memory_space<vmem>>, vector<1x8x384xf32>
    %218 = vector.shape_cast %217 : vector<1x8x384xf32> to vector<8x384xf32>
    %cst_71 = arith.constant dense<0.000000e+00> : vector<8x384xf32>
    %219 = tpu.matmul %208, %19, %cst_71 {dimension_numbers = #tpu.dot_dimension_numbers<[1], [0], [0], [1], [0, 0, 1, 1], [], []>} : vector<8x32xf32>, vector<32x384xf32>, vector<8x384xf32> -> vector<8x384xf32>
    %220 = arith.addf %219, %22 : vector<8x384xf32>
    %221 = vector.extract_strided_slice %218 {offsets = [0, 0], sizes = [8, 32], strides = [1, 1]} : vector<8x384xf32> to vector<8x32xf32>
    %222 = vector.extract_strided_slice %220 {offsets = [0, 0], sizes = [8, 32], strides = [1, 1]} : vector<8x384xf32> to vector<8x32xf32>
    %223 = arith.addf %221, %222 : vector<8x32xf32>
    %224 = arith.negf %223 : vector<8x32xf32>
    %225 = math.exp %224 : vector<8x32xf32>
    %cst_72 = arith.constant 1.000000e+00 : f32
    %226 = vector.broadcast %cst_72 : f32 to vector<8x32xf32>
    %227 = arith.addf %226, %225 : vector<8x32xf32>
    %228 = arith.divf %226, %227 : vector<8x32xf32>
    %229 = vector.extract_strided_slice %218 {offsets = [0, 128], sizes = [8, 32], strides = [1, 1]} : vector<8x384xf32> to vector<8x32xf32>
    %230 = vector.extract_strided_slice %220 {offsets = [0, 128], sizes = [8, 32], strides = [1, 1]} : vector<8x384xf32> to vector<8x32xf32>
    %231 = arith.addf %229, %230 : vector<8x32xf32>
    %232 = arith.negf %231 : vector<8x32xf32>
    %233 = math.exp %232 : vector<8x32xf32>
    %cst_73 = arith.constant 1.000000e+00 : f32
    %234 = vector.broadcast %cst_73 : f32 to vector<8x32xf32>
    %235 = arith.addf %234, %233 : vector<8x32xf32>
    %236 = arith.divf %234, %235 : vector<8x32xf32>
    %237 = vector.extract_strided_slice %218 {offsets = [0, 256], sizes = [8, 32], strides = [1, 1]} : vector<8x384xf32> to vector<8x32xf32>
    %238 = vector.extract_strided_slice %220 {offsets = [0, 256], sizes = [8, 32], strides = [1, 1]} : vector<8x384xf32> to vector<8x32xf32>
    %239 = arith.mulf %228, %238 : vector<8x32xf32>
    %240 = arith.addf %237, %239 : vector<8x32xf32>
    %241 = math.tanh %240 : vector<8x32xf32>
    %cst_74 = arith.constant 1.000000e+00 : f32
    %242 = vector.broadcast %cst_74 : f32 to vector<8x32xf32>
    %243 = arith.subf %242, %236 : vector<8x32xf32>
    %244 = arith.mulf %243, %241 : vector<8x32xf32>
    %245 = arith.mulf %236, %208 : vector<8x32xf32>
    %246 = arith.addf %244, %245 : vector<8x32xf32>
    %cst_75 = arith.constant 0.000000e+00 : f32
    %247 = vector.broadcast %cst_75 : f32 to vector<8x32xf32>
    %248 = arith.maximumf %246, %247 : vector<8x32xf32>
    %249 = arith.index_cast %215 : i32 to index
    %c0_76 = arith.constant 0 : index
    %c0_77 = arith.constant 0 : index
    %250 = vector.load %arg15[%249, %c0_76, %c0_77] : memref<8x8x32xf32, #tpu.memory_space<vmem>>, vector<1x8x32xf32>
    %251 = vector.shape_cast %250 : vector<1x8x32xf32> to vector<8x32xf32>
    %252 = vector.shape_cast %248 : vector<8x32xf32> to vector<1x8x32xf32>
    tpu.vector_store %arg15[%249, %c0_76, %c0_77], %252 {strides = array<i32>} : memref<8x8x32xf32, #tpu.memory_space<vmem>>, vector<1x8x32xf32>,
    %c6_i32 = arith.constant 6 : i32
    %253 = arith.addi %24, %c6_i32 : i32
    %254 = arith.index_cast %253 : i32 to index
    %c0_78 = arith.constant 0 : index
    %c0_79 = arith.constant 0 : index
    %255 = vector.load %arg14[%254, %c0_78, %c0_79] : memref<8x8x384xf32, #tpu.memory_space<vmem>>, vector<1x8x384xf32>
    %256 = vector.shape_cast %255 : vector<1x8x384xf32> to vector<8x384xf32>
    %cst_80 = arith.constant dense<0.000000e+00> : vector<8x384xf32>
    %257 = tpu.matmul %246, %19, %cst_80 {dimension_numbers = #tpu.dot_dimension_numbers<[1], [0], [0], [1], [0, 0, 1, 1], [], []>} : vector<8x32xf32>, vector<32x384xf32>, vector<8x384xf32> -> vector<8x384xf32>
    %258 = arith.addf %257, %22 : vector<8x384xf32>
    %259 = vector.extract_strided_slice %256 {offsets = [0, 0], sizes = [8, 32], strides = [1, 1]} : vector<8x384xf32> to vector<8x32xf32>
    %260 = vector.extract_strided_slice %258 {offsets = [0, 0], sizes = [8, 32], strides = [1, 1]} : vector<8x384xf32> to vector<8x32xf32>
    %261 = arith.addf %259, %260 : vector<8x32xf32>
    %262 = arith.negf %261 : vector<8x32xf32>
    %263 = math.exp %262 : vector<8x32xf32>
    %cst_81 = arith.constant 1.000000e+00 : f32
    %264 = vector.broadcast %cst_81 : f32 to vector<8x32xf32>
    %265 = arith.addf %264, %263 : vector<8x32xf32>
    %266 = arith.divf %264, %265 : vector<8x32xf32>
    %267 = vector.extract_strided_slice %256 {offsets = [0, 128], sizes = [8, 32], strides = [1, 1]} : vector<8x384xf32> to vector<8x32xf32>
    %268 = vector.extract_strided_slice %258 {offsets = [0, 128], sizes = [8, 32], strides = [1, 1]} : vector<8x384xf32> to vector<8x32xf32>
    %269 = arith.addf %267, %268 : vector<8x32xf32>
    %270 = arith.negf %269 : vector<8x32xf32>
    %271 = math.exp %270 : vector<8x32xf32>
    %cst_82 = arith.constant 1.000000e+00 : f32
    %272 = vector.broadcast %cst_82 : f32 to vector<8x32xf32>
    %273 = arith.addf %272, %271 : vector<8x32xf32>
    %274 = arith.divf %272, %273 : vector<8x32xf32>
    %275 = vector.extract_strided_slice %256 {offsets = [0, 256], sizes = [8, 32], strides = [1, 1]} : vector<8x384xf32> to vector<8x32xf32>
    %276 = vector.extract_strided_slice %258 {offsets = [0, 256], sizes = [8, 32], strides = [1, 1]} : vector<8x384xf32> to vector<8x32xf32>
    %277 = arith.mulf %266, %276 : vector<8x32xf32>
    %278 = arith.addf %275, %277 : vector<8x32xf32>
    %279 = math.tanh %278 : vector<8x32xf32>
    %cst_83 = arith.constant 1.000000e+00 : f32
    %280 = vector.broadcast %cst_83 : f32 to vector<8x32xf32>
    %281 = arith.subf %280, %274 : vector<8x32xf32>
    %282 = arith.mulf %281, %279 : vector<8x32xf32>
    %283 = arith.mulf %274, %246 : vector<8x32xf32>
    %284 = arith.addf %282, %283 : vector<8x32xf32>
    %cst_84 = arith.constant 0.000000e+00 : f32
    %285 = vector.broadcast %cst_84 : f32 to vector<8x32xf32>
    %286 = arith.maximumf %284, %285 : vector<8x32xf32>
    %287 = arith.index_cast %253 : i32 to index
    %c0_85 = arith.constant 0 : index
    %c0_86 = arith.constant 0 : index
    %288 = vector.load %arg15[%287, %c0_85, %c0_86] : memref<8x8x32xf32, #tpu.memory_space<vmem>>, vector<1x8x32xf32>
    %289 = vector.shape_cast %288 : vector<1x8x32xf32> to vector<8x32xf32>
    %290 = vector.shape_cast %286 : vector<8x32xf32> to vector<1x8x32xf32>
    tpu.vector_store %arg15[%287, %c0_85, %c0_86], %290 {strides = array<i32>} : memref<8x8x32xf32, #tpu.memory_space<vmem>>, vector<1x8x32xf32>,
    %c7_i32 = arith.constant 7 : i32
    %291 = arith.addi %24, %c7_i32 : i32
    %292 = arith.index_cast %291 : i32 to index
    %c0_87 = arith.constant 0 : index
    %c0_88 = arith.constant 0 : index
    %293 = vector.load %arg14[%292, %c0_87, %c0_88] : memref<8x8x384xf32, #tpu.memory_space<vmem>>, vector<1x8x384xf32>
    %294 = vector.shape_cast %293 : vector<1x8x384xf32> to vector<8x384xf32>
    %cst_89 = arith.constant dense<0.000000e+00> : vector<8x384xf32>
    %295 = tpu.matmul %284, %19, %cst_89 {dimension_numbers = #tpu.dot_dimension_numbers<[1], [0], [0], [1], [0, 0, 1, 1], [], []>} : vector<8x32xf32>, vector<32x384xf32>, vector<8x384xf32> -> vector<8x384xf32>
    %296 = arith.addf %295, %22 : vector<8x384xf32>
    %297 = vector.extract_strided_slice %294 {offsets = [0, 0], sizes = [8, 32], strides = [1, 1]} : vector<8x384xf32> to vector<8x32xf32>
    %298 = vector.extract_strided_slice %296 {offsets = [0, 0], sizes = [8, 32], strides = [1, 1]} : vector<8x384xf32> to vector<8x32xf32>
    %299 = arith.addf %297, %298 : vector<8x32xf32>
    %300 = arith.negf %299 : vector<8x32xf32>
    %301 = math.exp %300 : vector<8x32xf32>
    %cst_90 = arith.constant 1.000000e+00 : f32
    %302 = vector.broadcast %cst_90 : f32 to vector<8x32xf32>
    %303 = arith.addf %302, %301 : vector<8x32xf32>
    %304 = arith.divf %302, %303 : vector<8x32xf32>
    %305 = vector.extract_strided_slice %294 {offsets = [0, 128], sizes = [8, 32], strides = [1, 1]} : vector<8x384xf32> to vector<8x32xf32>
    %306 = vector.extract_strided_slice %296 {offsets = [0, 128], sizes = [8, 32], strides = [1, 1]} : vector<8x384xf32> to vector<8x32xf32>
    %307 = arith.addf %305, %306 : vector<8x32xf32>
    %308 = arith.negf %307 : vector<8x32xf32>
    %309 = math.exp %308 : vector<8x32xf32>
    %cst_91 = arith.constant 1.000000e+00 : f32
    %310 = vector.broadcast %cst_91 : f32 to vector<8x32xf32>
    %311 = arith.addf %310, %309 : vector<8x32xf32>
    %312 = arith.divf %310, %311 : vector<8x32xf32>
    %313 = vector.extract_strided_slice %294 {offsets = [0, 256], sizes = [8, 32], strides = [1, 1]} : vector<8x384xf32> to vector<8x32xf32>
    %314 = vector.extract_strided_slice %296 {offsets = [0, 256], sizes = [8, 32], strides = [1, 1]} : vector<8x384xf32> to vector<8x32xf32>
    %315 = arith.mulf %304, %314 : vector<8x32xf32>
    %316 = arith.addf %313, %315 : vector<8x32xf32>
    %317 = math.tanh %316 : vector<8x32xf32>
    %cst_92 = arith.constant 1.000000e+00 : f32
    %318 = vector.broadcast %cst_92 : f32 to vector<8x32xf32>
    %319 = arith.subf %318, %312 : vector<8x32xf32>
    %320 = arith.mulf %319, %317 : vector<8x32xf32>
    %321 = arith.mulf %312, %284 : vector<8x32xf32>
    %322 = arith.addf %320, %321 : vector<8x32xf32>
    %cst_93 = arith.constant 0.000000e+00 : f32
    %323 = vector.broadcast %cst_93 : f32 to vector<8x32xf32>
    %324 = arith.maximumf %322, %323 : vector<8x32xf32>
    %325 = arith.index_cast %291 : i32 to index
    %c0_94 = arith.constant 0 : index
    %c0_95 = arith.constant 0 : index
    %326 = vector.load %arg15[%325, %c0_94, %c0_95] : memref<8x8x32xf32, #tpu.memory_space<vmem>>, vector<1x8x32xf32>
    %327 = vector.shape_cast %326 : vector<1x8x32xf32> to vector<8x32xf32>
    %328 = vector.shape_cast %324 : vector<8x32xf32> to vector<1x8x32xf32>
    tpu.vector_store %arg15[%325, %c0_94, %c0_95], %328 {strides = array<i32>} : memref<8x8x32xf32, #tpu.memory_space<vmem>>, vector<1x8x32xf32>,
    %c1_i32_96 = arith.constant 1 : i32
    %c0_97 = arith.constant 0 : index
    %c0_98 = arith.constant 0 : index
    %329 = vector.load %arg16[%c0_97, %c0_98] : memref<8x32xf32, #tpu.memory_space<vmem>>, vector<8x32xf32>
    tpu.vector_store %arg16[%c0_97, %c0_98], %322 {strides = array<i32>} : memref<8x32xf32, #tpu.memory_space<vmem>>, vector<8x32xf32>,
    %c0_99 = arith.constant 0 : index
    %c0_100 = arith.constant 0 : index
    %330 = vector.load %arg13[%c0_99, %c0_100] : memref<8x32xf32, #tpu.memory_space<vmem>>, vector<8x32xf32>
    tpu.vector_store %arg13[%c0_99, %c0_100], %322 {strides = array<i32>} : memref<8x32xf32, #tpu.memory_space<vmem>>, vector<8x32xf32>,
    %c0_101 = arith.constant 0 : index
    %c0_102 = arith.constant 0 : index
    %c0_103 = arith.constant 0 : index
    %331 = vector.load %arg15[%c0_101, %c0_102, %c0_103] : memref<8x8x32xf32, #tpu.memory_space<vmem>>, vector<8x8x32xf32>
    %332 = vector.shape_cast %331 : vector<8x8x32xf32> to vector<64x32xf32>
    %c0_104 = arith.constant 0 : index
    %c0_105 = arith.constant 0 : index
    %333 = vector.load %arg9[%c0_104, %c0_105] : memref<32x128xf32, #tpu.memory_space<vmem>>, vector<32x128xf32>
    %cst_106 = arith.constant dense<0.000000e+00> : vector<64x128xf32>
    %334 = tpu.matmul %332, %333, %cst_106 {dimension_numbers = #tpu.dot_dimension_numbers<[1], [0], [0], [1], [0, 0, 1, 1], [], []>} : vector<64x32xf32>, vector<32x128xf32>, vector<64x128xf32> -> vector<64x128xf32>
    %c0_107 = arith.constant 0 : index
    %c0_108 = arith.constant 0 : index
    %335 = vector.load %arg10[%c0_107, %c0_108] : memref<1x128xf32, #tpu.memory_space<vmem>>, vector<1x128xf32>
    %336 = vector.broadcast %335 : vector<1x128xf32> to vector<64x128xf32>
    %337 = arith.addf %334, %336 : vector<64x128xf32>
    %338 = math.tanh %337 : vector<64x128xf32>
    %339 = vector.shape_cast %338 : vector<64x128xf32> to vector<8x8x128xf32>
    %c0_109 = arith.constant 0 : index
    %c0_110 = arith.constant 0 : index
    %c0_111 = arith.constant 0 : index
    %340 = vector.load %arg12[%c0_109, %c0_110, %c0_111] : memref<8x8x128xf32, #tpu.memory_space<vmem>>, vector<8x8x128xf32>
    tpu.vector_store %arg12[%c0_109, %c0_110, %c0_111], %339 {strides = array<i32>} : memref<8x8x128xf32, #tpu.memory_space<vmem>>, vector<8x8x128xf32>,
    return
  }
  func.func @transform_0(%arg0: i32, %arg1: i32) -> (i32, i32, i32) {
    %c0_i32 = arith.constant 0 : i32
    %c0_i32_0 = arith.constant 0 : i32
    return %arg1, %arg0, %c0_i32 : i32, i32, i32
  }
  func.func @transform_1(%arg0: i32, %arg1: i32) -> (i32, i32) {
    %c0_i32 = arith.constant 0 : i32
    %c0_i32_0 = arith.constant 0 : i32
    %c0_i32_1 = arith.constant 0 : i32
    return %c0_i32, %c0_i32_0 : i32, i32
  }
  func.func @transform_2(%arg0: i32, %arg1: i32) -> (i32, i32) {
    %c0_i32 = arith.constant 0 : i32
    %c0_i32_0 = arith.constant 0 : i32
    %c0_i32_1 = arith.constant 0 : i32
    return %c0_i32, %c0_i32_0 : i32, i32
  }
  func.func @transform_3(%arg0: i32, %arg1: i32) -> (i32, i32) {
    %c0_i32 = arith.constant 0 : i32
    %c0_i32_0 = arith.constant 0 : i32
    %c0_i32_1 = arith.constant 0 : i32
    return %c0_i32, %c0_i32_0 : i32, i32
  }
  func.func @transform_4(%arg0: i32, %arg1: i32) -> (i32, i32) {
    %c0_i32 = arith.constant 0 : i32
    %c0_i32_0 = arith.constant 0 : i32
    %c0_i32_1 = arith.constant 0 : i32
    return %c0_i32, %c0_i32_0 : i32, i32
  }
  func.func @transform_5(%arg0: i32, %arg1: i32) -> (i32, i32) {
    %c0_i32 = arith.constant 0 : i32
    %c0_i32_0 = arith.constant 0 : i32
    %c0_i32_1 = arith.constant 0 : i32
    return %c0_i32, %c0_i32_0 : i32, i32
  }
  func.func @transform_6(%arg0: i32, %arg1: i32) -> (i32, i32) {
    %c0_i32 = arith.constant 0 : i32
    %c0_i32_0 = arith.constant 0 : i32
    %c0_i32_1 = arith.constant 0 : i32
    return %c0_i32, %c0_i32_0 : i32, i32
  }
  func.func @transform_7(%arg0: i32, %arg1: i32) -> (i32, i32) {
    %c0_i32 = arith.constant 0 : i32
    %c0_i32_0 = arith.constant 0 : i32
    %c0_i32_1 = arith.constant 0 : i32
    return %c0_i32, %c0_i32_0 : i32, i32
  }
  func.func @transform_8(%arg0: i32, %arg1: i32) -> (i32, i32) {
    %c0_i32 = arith.constant 0 : i32
    %c0_i32_0 = arith.constant 0 : i32
    %c0_i32_1 = arith.constant 0 : i32
    return %c0_i32, %c0_i32_0 : i32, i32
  }
  func.func @transform_9(%arg0: i32, %arg1: i32) -> (i32, i32) {
    %c0_i32 = arith.constant 0 : i32
    %c0_i32_0 = arith.constant 0 : i32
    return %arg0, %c0_i32 : i32, i32
  }
  func.func @transform_10(%arg0: i32, %arg1: i32) -> (i32, i32, i32) {
    %c0_i32 = arith.constant 0 : i32
    %c0_i32_0 = arith.constant 0 : i32
    return %arg1, %arg0, %c0_i32 : i32, i32, i32
  }
  func.func @transform_11(%arg0: i32, %arg1: i32) -> (i32, i32) {
    %c0_i32 = arith.constant 0 : i32
    %c0_i32_0 = arith.constant 0 : i32
    return %arg0, %c0_i32 : i32, i32
  }
}

</mosaic_0001>

<bundles_post_ra>
// kernel: deep_rnn_policy.1
= control target key start
LH: loop header
LB: loop body
LE: loop exit
PB: predicated region body
PF: predicated region fallthrough
CT: control target
= control target key end

     0   :  { %vm61_vm0 = vcmask 130048   ;;  %v2459_v22 = vmov 0.0   ;;  %vm42_vm1 = vcmask 261120   ;;  %vm2460_vm2 = vmmov 0   ;;  %s3056_s1 = inlined_call_operand.vmem [shape: f32[16,32], index: 1, kind: input, shape index: {}]   ;;  %s3057_s0 = inlined_call_operand.vmem [shape: f32[8,8,16], index: 0, kind: input, shape index: {}]   ;;  %s3058_s3 = inlined_call_operand.vmem [shape: f32[32,384], index: 3, kind: input, shape index: {}]   ;;  %s3059_s4 = inlined_call_operand.vmem [shape: f32[32,384], index: 4, kind: input, shape index: {}]   ;;  %s3060_s9 = inlined_call_operand.vmem [shape: f32[8,32], index: 9, kind: input, shape index: {}]   ;;  %s3061_s2 = inlined_call_operand.vmem [shape: f32[1,32], index: 2, kind: input, shape index: {}]   ;;  %s3062_s5 = inlined_call_operand.vmem [shape: f32[1,384], index: 5, kind: input, shape index: {}]   ;;  %s3063_s6 = inlined_call_operand.vmem [shape: f32[1,384], index: 6, kind: input, shape index: {}]   ;;  %s3064_s7 = inlined_call_operand.vmem [shape: f32[32,128], index: 7, kind: input, shape index: {}]   ;;  %s3065_s8 = inlined_call_operand.vmem [shape: f32[1,128], index: 8, kind: input, shape index: {}]   ;;  %s3066_s10 = inlined_call_operand.vmem [shape: f32[8,8,128], index: 10, kind: output, shape index: {0}]   ;;  %s3067_s11 = inlined_call_operand.vmem [shape: f32[8,32], index: 11, kind: output, shape index: {1}]  }
   0x1   :  { %v53_v0 = vld [vmem:[%s3056_s1 + $0x8] sm:$0xff]  ;;  %v52_v1 = vld [vmem:[%s3056_s1] sm:$0xff]  ;;  %v46_v4 = vld [vmem:[%s3057_s0 + $0x10] sm:$0xff]  ;;  %v213_v62 = vlaneseq }
   0x2   :  { %v44_v2 = vld [vmem:[%s3057_s0] sm:$0xff]  ;;  %2213 = vmatprep.subr.mxu0 %v53_v0  ;;  %v45_v3 = vld [vmem:[%s3057_s0 + $0x8] sm:$0xff]  ;;  %2357 = vmatprep.subr.mxu1 %v53_v0  ;;  %v209_v7 = vld [vmem:[%s3058_s3 + $0x50] sm:$0xff] }
   0x3   :  { %2217 = vmatprep.mubr.msk.f32.mxu0 %vm61_vm0, %v44_v2  ;;  %2214 = vmatpush3.msra.mxu0 %v53_v0  ;;  %v48_v5 = vld [vmem:[%s3057_s0 + $0x20] sm:$0xff]  ;;  %v49_v6 = vld [vmem:[%s3057_s0 + $0x28] sm:$0xff]  ;;  %v50_v8 = vld [vmem:[%s3057_s0 + $0x30] sm:$0xff]  ;;  %v2732_v63 = vshrl.u32 %v213_v62, 7 }
   0x4   :  { %2215 = vmatprep.subr.mxu0 %v52_v1  ;;  %2359 = vmatpush3.msra.mxu1 %v53_v0  ;;  %v210_v9 = vld [vmem:[%s3058_s3 + $0x58] sm:$0xff]  ;;  %v208_v12 = vld [vmem:[%s3058_s3 + $0x48] sm:$0xff]  ;;  %v207_v14 = vld [vmem:[%s3058_s3 + $0x40] sm:$0xff] }
   0x5   :  { %2216 = vmatpush3.msra.mxu0 %v52_v1  ;;  %2358 = vmatprep.subr.mxu1 %v52_v1  ;;  %v47_v10 = vld [vmem:[%s3057_s0 + $0x18] sm:$0xff]  ;;  %v205_v15 = vld [vmem:[%s3058_s3 + $0x30] sm:$0xff]  ;;  %v203_v16 = vld [vmem:[%s3058_s3 + $0x20] sm:$0xff]  ;;  %v223_v0 = vsub.s32 2, %v2732_v63 }
   0x6   :  { %2218 = vmatmul.mubr.msk.f32.vlgmr.msra.gmra.mxu0 %vm61_vm0, %v45_v3  ;;  %2360 = vmatpush3.msra.mxu1 %v52_v1  ;;  %v51_v11 = vld [vmem:[%s3057_s0 + $0x38] sm:$0xff]  ;;  %v204_v17 = vld [vmem:[%s3058_s3 + $0x28] sm:$0xff]  ;;  %v201_v20 = vld [vmem:[%s3058_s3 + $0x10] sm:$0xff]  ;;  %v215_v3 = vsub.s32 0, %v2732_v63 }
   0x7   :  { %2220 = vmatprep.mubr.msk.f32.mxu0 %vm61_vm0, %v46_v4  ;;  %2223 = vmatprep.mubr.msk.f32.mxu1 %vm61_vm0, %v48_v5  ;;  %v206_v13 = vld [vmem:[%s3058_s3 + $0x38] sm:$0xff]  ;;  %v200_v19 = vld [vmem:[%s3058_s3 + $0x8] sm:$0xff]  ;;  %v199_v21 = vld [vmem:[%s3058_s3] sm:$0xff] }
   0x8   :  { %2224 = vmatmul.mubr.msk.f32.vlgmr.msra.gmra.mxu1 %vm61_vm0, %v49_v6  ;;  %277 = vmatprep.subr.mxu1 %v209_v7  ;;  %v202_v18 = vld [vmem:[%s3058_s3 + $0x18] sm:$0xff]  ;;  %v2600_v23 = vld [vmem:[%s3059_s4 + $0x50] sm:$0xff]  ;;  %v41_v24 = vld [vmem:[%s3060_s9] sm:$0xff]  ;;  %v219_v6 = vsub.s32 1, %v2732_v63 }
   0x9   :  { %2226 = vmatprep.mubr.msk.f32.mxu1 %vm61_vm0, %v50_v8  ;;  %2229 = vmatprep.subr.mxu0 %v210_v9  ;;  %43 = vst.msk [vmem:[#allocation4] sm:$0xff] %vm42_vm1, %v41_v24  ;;  %v2073_v25 = vld [vmem:[%s3061_s2] ss:$0 sm:$0xff]  ;;  %v2613_v38 = vld [vmem:[%s3059_s4 + $0x48] sm:$0xff]  ;;  %v2618_v40 = vld [vmem:[%s3059_s4 + $0x58] sm:$0xff] }
   0xa   :  { %2221 = vmatmul.mubr.msk.f32.gmra.mxu0 %vm61_vm0, %v47_v10  ;;  %278 = vmatpush1.msra.mxu1 %v208_v12  ;;  %v2625_v42 = vld [vmem:[%s3059_s4 + $0x38] sm:$0xff]  ;;  %v2635_v49 = vld [vmem:[%s3059_s4 + $0x30] sm:$0xff]  ;;  %v2643_v50 = vld [vmem:[%s3059_s4 + $0x20] sm:$0xff] }
   0xb   :  { %2230 = vmatpush3.msra.mxu0 %v210_v9  ;;  %279 = vmatprep.subr.mxu1 %v206_v13  ;;  %v2648_v51 = vld [vmem:[%s3059_s4 + $0x40] sm:$0xff]  ;;  %v2655_v52 = vld [vmem:[%s3059_s4 + $0x18] sm:$0xff]  ;;  %v2663_v56 = vld [vmem:[%s3059_s4 + $0x8] sm:$0xff] }
   0xc   :  { %2227 = vmatmul.mubr.msk.f32.gmra.mxu1 %vm61_vm0, %v51_v11  ;;  %2231 = vmatprep.subr.mxu0 %v207_v14  ;;  %v2671_v57 = vld [vmem:[%s3059_s4] sm:$0xff]  ;;  %v2682_v59 = vld [vmem:[%s3059_s4 + $0x28] sm:$0xff]  ;;  %v2696_v61 = vld [vmem:[%s3059_s4 + $0x10] sm:$0xff] }
   0xd   :  { %280 = vmatpush1.msra.mxu1 %v205_v15  ;;  %2232 = vmatpush3.msra.mxu0 %v207_v14  ;;  %v211_v1 = vld [vmem:[%s3062_s5] sm:$0x7] }
   0xe   :  { %281 = vmatprep.subr.mxu1 %v203_v16  ;;  %2233 = vmatprep.subr.mxu0 %v204_v17  ;;  %v2740_v2 = vrot.slane %v211_v1, %v223_v0  ;;  %v216_v9 = vrot.slane %v211_v1, %v215_v3  ;;  %v220_v12 = vrot.slane %v211_v1, %v219_v6 }
   0xf   :  { %282 = vmatpush1.msra.mxu1 %v202_v18  ;;  %2234 = vmatpush3.msra.mxu0 %v204_v17 }
  0x10   :  { %283 = vmatprep.subr.mxu1 %v200_v19  ;;  %2235 = vmatprep.subr.mxu0 %v201_v20  ;;  %v2689_v60 = vld [vmem:[#allocation4] sm:$0xff] }
  0x11   :  { %284 = vmatpush1.msra.mxu1 %v199_v21  ;;  %317 = vmatprep.mubr.f32.mxu1 %v2459_v22 }
  0x12   :  { %2236 = vmatpush3.msra.mxu0 %v201_v20  ;;  %2249 = vmatprep.subr.mxu1 %v2459_v22 }
  0x13   :  { %555 = vmatprep.subr.mxu0 %v2600_v23 }
  0xc6   :  { %v2219_v26 = vpop.f32.mrf.mxu0 }
  0xc7   :  { %v158_v27 = vadd.f32 %v2219_v26, %v2073_v25 }
  0xc8   :  { %v152_v28 = vpop.f32.mrf.mxu0  ;;  %v2225_v29 = vpop.f32.mrf.mxu1 }
  0xc9   :  { %v153_v30 = vadd.f32 %v2073_v25, %v152_v28  ;;  %v192_v35 = vmax.f32 %v158_v27, 0.0  ;;  %v178_v48 = vadd.f32 %v2225_v29, %v2073_v25  ;;  %v507_v29 = vld [vmem:[%s3063_s6] sm:$0x7] }
  0xca   :  { %v2222_v31 = vpop.f32.mrf.mxu0  ;;  %v172_v32 = vpop.f32.mrf.mxu1 }
  0xcb   :  { %v191_v33 = vmax.f32 %v153_v30, 0.0  ;;  %v173_v34 = vadd.f32 %v2073_v25, %v172_v32  ;;  %v168_v36 = vadd.f32 %v2222_v31, %v2073_v25  ;;  %v196_v54 = vmax.f32 %v178_v48, 0.0 }
  0xcc   :  { %v162_v37 = vpop.f32.mrf.mxu0  ;;  %v2228_v39 = vpop.f32.mrf.mxu1 }
  0xcd   :  { %v163_v41 = vadd.f32 %v2073_v25, %v162_v37  ;;  %2082 = vmatmul.mubr.msk.f32.vlgmr.msra.gmra.mxu1 %vm42_vm1, %v191_v33  ;;  %2237 = vmatprep.mubr.msk.f32.mxu0 %vm42_vm1, %v191_v33  ;;  %v195_v45 = vmax.f32 %v173_v34, 0.0  ;;  %v194_v47 = vmax.f32 %v168_v36, 0.0  ;;  %v188_v55 = vadd.f32 %v2228_v39, %v2073_v25 }
  0xce   :  { %2238 = vmatmul.mubr.msk.f32.vlgmr.msra.gmra.mxu0 %vm42_vm1, %v192_v35  ;;  %323 = vmatprep.mubr.f32.mxu1 %v2459_v22  ;;  %v182_v43 = vpop.f32.mrf.mxu1  ;;  %v2777_v36 = vrot.slane %v507_v29, %v215_v3 }
  0xcf   :  { %v193_v44 = vmax.f32 %v163_v41, 0.0  ;;  %556 = vmatpush1.msra.mxu0 %v2613_v38  ;;  %v183_v46 = vadd.f32 %v2073_v25, %v182_v43  ;;  %2250 = vmatpush3.msra.mxu1 %v2618_v40  ;;  %v198_v58 = vmax.f32 %v188_v55, 0.0 }
  0xd0   :  { %557 = vmatprep.subr.mxu0 %v2625_v42  ;;  %2251 = vmatprep.subr.mxu1 %v2459_v22 }
  0xd1   :  { %2083 = vmatmul.mubr.msk.f32.gmra.mxu1 %vm42_vm1, %v192_v35  ;;  %2240 = vmatprep.mubr.msk.f32.mxu0 %vm42_vm1, %v193_v44  ;;  %v197_v53 = vmax.f32 %v183_v46, 0.0 }
  0xd2   :  { %2241 = vmatmul.mubr.msk.f32.gmra.mxu0 %vm42_vm1, %v194_v47  ;;  %329 = vmatprep.mubr.f32.mxu1 %v2459_v22 }
  0xd3   :  { %558 = vmatpush1.msra.mxu0 %v2635_v49  ;;  %2243 = vmatprep.mubr.msk.f32.mxu0 %vm42_vm1, %v195_v45 }
  0xd4   :  { %559 = vmatprep.subr.mxu0 %v2643_v50  ;;  %2252 = vmatpush3.msra.mxu1 %v2648_v51 }
  0xd5   :  { %2084 = vmatmul.mubr.msk.f32.gmra.mxu1 %vm42_vm1, %v193_v44  ;;  %560 = vmatpush1.msra.mxu0 %v2655_v52 }
  0xd6   :  { %2244 = vmatmul.mubr.msk.f32.gmra.mxu0 %vm42_vm1, %v196_v54  ;;  %335 = vmatprep.mubr.f32.mxu1 %v2459_v22 }
  0xd7   :  { %2246 = vmatprep.mubr.msk.f32.mxu0 %vm42_vm1, %v197_v53  ;;  %561 = vmatprep.subr.mxu0 %v2663_v56 }
  0xd8   :  { %562 = vmatpush1.msra.mxu0 %v2671_v57  ;;  %2253 = vmatprep.subr.mxu1 %v2459_v22 }
  0xd9   :  { %2085 = vmatmul.mubr.msk.f32.gmra.mxu1 %vm42_vm1, %v194_v47  ;;  %726 = vmatprep.subr.mxu0 %v2600_v23 }
  0xda   :  { %2247 = vmatmul.mubr.msk.f32.gmra.mxu0 %vm42_vm1, %v198_v58  ;;  %341 = vmatprep.mubr.f32.mxu1 %v2459_v22 }
  0xdb   :  { %595 = vmatprep.mubr.f32.mxu0 %v2459_v22  ;;  %2254 = vmatpush3.msra.mxu1 %v2682_v59 }
  0xdc   :  { %2255 = vmatprep.subr.mxu1 %v2459_v22 }
  0xdd   :  { %2086 = vmatmul.mubr.msk.f32.gmra.mxu1 %vm42_vm1, %v195_v45 }
  0xde   :  { %2098 = vmatmul.mubr.msk.f32.vlgmr.msra.gmra.mxu0 %vm42_vm1, %v2689_v60  ;;  %347 = vmatprep.mubr.f32.mxu1 %v2459_v22 }
  0xdf   :  { %2256 = vmatpush3.msra.mxu1 %v2696_v61  ;;  %727 = vmatpush1.msra.mxu0 %v2613_v38 }
  0xe0   :  { %2260 = vmatprep.subr.mxu1 %v2459_v22  ;;  %728 = vmatprep.subr.mxu0 %v2625_v42 }
  0xe1   :  { %2087 = vmatmul.mubr.msk.f32.gmra.mxu1 %vm42_vm1, %v196_v54  ;;  %729 = vmatpush1.msra.mxu0 %v2635_v49 }
  0xe2   :  { %353 = vmatprep.mubr.f32.mxu1 %v2459_v22  ;;  %730 = vmatprep.subr.mxu0 %v2643_v50 }
  0xe3   :  { %731 = vmatpush1.msra.mxu0 %v2655_v52  ;;  %766 = vmatprep.mubr.f32.mxu0 %v2459_v22 }
  0xe4   :  { %732 = vmatprep.subr.mxu0 %v2663_v56 }
  0xe5   :  { %2088 = vmatmul.mubr.msk.f32.gmra.mxu1 %vm42_vm1, %v197_v53  ;;  %733 = vmatpush1.msra.mxu0 %v2671_v57  ;;  %v2787_v53 = vrot.slane %v507_v29, %v219_v6 }
  0xe6   :  { %359 = vmatprep.mubr.f32.mxu1 %v2459_v22  ;;  %898 = vmatprep.subr.mxu0 %v2600_v23 }
  0xe9   :  { %2089 = vmatmul.mubr.msk.f32.gmra.mxu1 %vm42_vm1, %v198_v58 }
  0xea   :  { %2257 = vmatprep.mubr.msk.f32.mxu1 %vm2460_vm2, %v2459_v22 }
  0xed   :  { %2258 = vmatmul.mubr.msk.f32.vlgmr.msra.gmra.mxu1 %vm42_vm1, %v2689_v60 }
  0xee   :  { %2261 = vmatpush3.msra.mxu1 %v2618_v40  ;;  %2268 = vmatprep.mubr.msk.f32.mxu1 %vm2460_vm2, %v2459_v22 }
  0xef   :  { %2262 = vmatprep.subr.mxu1 %v2459_v22 }
  0xf0   :  { %2263 = vmatpush3.msra.mxu1 %v2648_v51 }
  0xf1   :  { %2264 = vmatprep.subr.mxu1 %v2459_v22 }
  0xf2   :  { %2265 = vmatpush3.msra.mxu1 %v2682_v59 }
  0xf3   :  { %2266 = vmatprep.subr.mxu1 %v2459_v22 }
  0xf4   :  { %2267 = vmatpush3.msra.mxu1 %v2696_v61 }
  0xf5   :  { %2271 = vmatprep.subr.mxu1 %v2459_v22 }
 0x18d   :  { %v319_v4 = vpop.f32.mrf.mxu1 }
 0x18e   :  { %v2239_v5 = vpop.f32.mrf.mxu0  ;;  %v320_v46 = vadd.f32 %v319_v4, %v216_v9 }
 0x18f   :  { %v2745_v7 = vadd.f32 %v2239_v5, %v2740_v2  ;;  %v321_v8 = vpop.f32.mrf.mxu1 }
 0x190   :  { %v2747_v10 = vpop.f32.mrf.mxu0 }
 0x191   :  { %v325_v11 = vpop.f32.mrf.mxu1 }
 0x192   :  { %v2749_v13 = vadd.f32 %v325_v11, %v216_v9  ;;  %v2242_v14 = vpop.f32.mrf.mxu0 }
 0x193   :  { %v2752_v15 = vadd.f32 %v2242_v14, %v2740_v2  ;;  %v327_v16 = vpop.f32.mrf.mxu1 }
 0x194   :  { %v2754_v17 = vadd.f32 %v327_v16, %v220_v12  ;;  %v442_v18 = vpop.f32.mrf.mxu0  ;;  %v322_v16 = vadd.f32 %v321_v8, %v220_v12 }
 0x195   :  { %v2757_v19 = vadd.f32 %v442_v18, %v2740_v2  ;;  %v331_v20 = vpop.f32.mrf.mxu1 }
 0x196   :  { %v2759_v21 = vadd.f32 %v331_v20, %v216_v9  ;;  %v2245_v24 = vpop.f32.mrf.mxu0 }
 0x197   :  { %v2762_v25 = vadd.f32 %v2245_v24, %v2740_v2  ;;  %v333_v26 = vpop.f32.mrf.mxu1 }
 0x198   :  { %v2764_v27 = vadd.f32 %v333_v26, %v220_v12  ;;  %v452_v28 = vpop.f32.mrf.mxu0 }
 0x199   :  { %v2770_v30 = vadd.f32 %v452_v28, %v2740_v2  ;;  %v337_v31 = vpop.f32.mrf.mxu1 }
 0x19a   :  { %v2772_v32 = vadd.f32 %v337_v31, %v216_v9  ;;  %v2248_v33 = vpop.f32.mrf.mxu0 }
 0x19b   :  { %v2775_v34 = vadd.f32 %v2248_v33, %v2740_v2  ;;  %v339_v35 = vpop.f32.mrf.mxu1 }
 0x19c   :  { %v2779_v37 = vadd.f32 %v339_v35, %v220_v12  ;;  %v462_v39 = vpop.f32.mrf.mxu0 }
 0x19d   :  { %v2782_v41 = vadd.f32 %v462_v39, %v2740_v2  ;;  %v343_v43 = vpop.f32.mrf.mxu1 }
 0x19e   :  { %v2784_v44 = vadd.f32 %v343_v43, %v216_v9  ;;  %v597_v45 = vpop.f32.mrf.mxu0 }
 0x19f   :  { %v598_v47 = vadd.f32 %v597_v45, %v2777_v36  ;;  %v345_v48 = vpop.f32.mrf.mxu1 }
 0x1a0   :  { %v2789_v54 = vadd.f32 %v345_v48, %v220_v12  ;;  %v599_v55 = vpop.f32.mrf.mxu0 }
 0x1a1   :  { %v672_v58 = vadd.f32 %v598_v47, %v320_v46  ;;  %v349_v62 = vpop.f32.mrf.mxu1  ;;  %v600_v5 = vadd.f32 %v599_v55, %v2787_v53  ;;  %v2806_v46 = vrot.slane %v507_v29, %v223_v0 }
 0x1a2   :  { %v2791_v1 = vadd.f32 %v349_v62, %v216_v9 }
 0x1a3   :  { %v2100_v3 = vmul.f32 -1.442695, %v672_v58  ;;  %v351_v11 = vpop.f32.mrf.mxu1  ;;  %v679_v6 = vadd.f32 %v600_v5, %v322_v16  ;;  %v433_v58 = vadd.f32 %v2747_v10, %v2740_v2 }
 0x1a4   :  { %v2794_v14 = vadd.f32 %v351_v11, %v220_v12 }
 0x1a5   :  { %2363 = vpow2.f32 %v2100_v3  ;;  %v355_v4 = vpop.f32.mrf.mxu1  ;;  %v2101_v31 = vmul.f32 -1.442695, %v679_v6 }
 0x1a6   :  { %v2796_v18 = vadd.f32 %v355_v4, %v216_v9 }
 0x1a7   :  { %v357_v20 = vpop.f32.mrf.mxu1  ;;  %2365 = vpow2.f32 %v2101_v31 }
 0x1a8   :  { %v2798_v24 = vadd.f32 %v357_v20, %v220_v12 }
 0x1a9   :  { %v361_v26 = vpop.f32.mrf.mxu1 }
 0x1aa   :  { %v2800_v28 = vadd.f32 %v361_v26, %v216_v9 }
 0x1ab   :  { %v363_v33 = vpop.f32.mrf.mxu1 }
 0x1ac   :  { %v2802_v35 = vadd.f32 %v363_v33, %v220_v12 }
 0x1ad   :  { %v668_v39 = vpop.f32.mrf.mxu1 }
 0x1ae   :  { %v669_v55 = vadd.f32 %v668_v39, %v2806_v46 }
 0x1af   :  { %v2259_v43 = vpop.f32.mrf.mxu1 }
 0x1b2   :  { %v2364_v45 = vpop.eup %2363 }
 0x1b3   :  { %v676_v8 = vadd.f32 1.0, %v2364_v45 }
 0x1b4   :  { %v2366_v47 = vpop.eup %2365 }
 0x1b5   :  { %2367 = vrcp.f32 %v676_v8  ;;  %v683_v48 = vadd.f32 1.0, %v2366_v47 }
 0x1b7   :  { %2369 = vrcp.f32 %v683_v48 }
 0x1c2   :  { %v2368_v9 = vpop.eup %2367 }
 0x1c3   :  { %v686_v12 = vmul.f32 %v2368_v9, %v669_v55 }
 0x1c4   :  { %v2370_v3 = vpop.eup %2369 }
 0x1c5   :  { %v687_v62 = vadd.f32 %v686_v12, %v433_v58  ;;  %v689_v5 = vsub.f32 1.0, %v2370_v3  ;;  %v691_v63 = vmul.f32 %v2370_v3, %v2689_v60 }
 0x1c7   :  { %2371 = vtanh.f32 %v687_v62 }
 0x1d4   :  { %v2372_v11 = vpop.eup %2371 }
 0x1d5   :  { %v690_v16 = vmul.f32 %v2372_v11, %v689_v5 }
 0x1d7   :  { %v692_v0 = vadd.f32 %v691_v63, %v690_v16 }
 0x1d9   :  { %v693_v29 = vmax.f32 %v692_v0, 0.0  ;;  %2102 = vmatmul.mubr.msk.f32.vlgmr.msra.gmra.mxu0 %vm42_vm1, %v692_v0  ;;  %2269 = vmatmul.mubr.msk.f32.vlgmr.msra.gmra.mxu1 %vm42_vm1, %v692_v0 }
 0x1da   :  { %899 = vmatpush1.msra.mxu0 %v2613_v38  ;;  %2272 = vmatpush3.msra.mxu1 %v2618_v40 }
 0x1db   :  { %694 = vst.msk [vmem:[#allocation3] sm:$0xff] %vm42_vm1, %v693_v29  ;;  %900 = vmatprep.subr.mxu0 %v2625_v42  ;;  %2273 = vmatprep.subr.mxu1 %v2459_v22 }
 0x1dc   :  { %901 = vmatpush1.msra.mxu0 %v2635_v49  ;;  %2274 = vmatpush3.msra.mxu1 %v2648_v51 }
 0x1dd   :  { %902 = vmatprep.subr.mxu0 %v2643_v50  ;;  %2275 = vmatprep.subr.mxu1 %v2459_v22 }
 0x1de   :  { %903 = vmatpush1.msra.mxu0 %v2655_v52  ;;  %2276 = vmatpush3.msra.mxu1 %v2682_v59 }
 0x1df   :  { %904 = vmatprep.subr.mxu0 %v2663_v56  ;;  %2277 = vmatprep.subr.mxu1 %v2459_v22 }
 0x1e0   :  { %905 = vmatpush1.msra.mxu0 %v2671_v57  ;;  %938 = vmatprep.mubr.f32.mxu0 %v2459_v22 }
 0x1e1   :  { %2278 = vmatpush3.msra.mxu1 %v2696_v61  ;;  %2279 = vmatprep.mubr.msk.f32.mxu1 %vm2460_vm2, %v2459_v22 }
 0x1e2   :  { %1070 = vmatprep.subr.mxu0 %v2600_v23  ;;  %2282 = vmatprep.subr.mxu1 %v2459_v22 }
 0x299   :  { %v768_v60 = vpop.f32.mrf.mxu0  ;;  %v839_v2 = vpop.f32.mrf.mxu1 }
 0x29a   :  { %v769_v10 = vadd.f32 %v768_v60, %v2777_v36  ;;  %v840_v48 = vadd.f32 %v839_v2, %v2806_v46 }
 0x29b   :  { %v770_v4 = vpop.f32.mrf.mxu0  ;;  %v2270_v6 = vpop.f32.mrf.mxu1 }
 0x29c   :  { %v843_v20 = vadd.f32 %v769_v10, %v2749_v13  ;;  %v771_v31 = vadd.f32 %v770_v4, %v2787_v53 }
 0x29e   :  { %v2104_v26 = vmul.f32 -1.442695, %v843_v20  ;;  %v850_v33 = vadd.f32 %v771_v31, %v2754_v17 }
 0x2a0   :  { %2373 = vpow2.f32 %v2104_v26  ;;  %v2105_v39 = vmul.f32 -1.442695, %v850_v33 }
 0x2a2   :  { %2375 = vpow2.f32 %v2105_v39 }
 0x2ad   :  { %v2374_v43 = vpop.eup %2373 }
 0x2ae   :  { %v847_v45 = vadd.f32 1.0, %v2374_v43 }
 0x2af   :  { %v2376_v8 = vpop.eup %2375 }
 0x2b0   :  { %2377 = vrcp.f32 %v847_v45  ;;  %v854_v47 = vadd.f32 1.0, %v2376_v8 }
 0x2b2   :  { %2379 = vrcp.f32 %v854_v47 }
 0x2bd   :  { %v2378_v55 = vpop.eup %2377 }
 0x2be   :  { %v857_v9 = vmul.f32 %v2378_v55, %v840_v48 }
 0x2bf   :  { %v2380_v58 = vpop.eup %2379 }
 0x2c0   :  { %v858_v13 = vadd.f32 %v857_v9, %v2745_v7  ;;  %v860_v12 = vsub.f32 1.0, %v2380_v58  ;;  %v862_v17 = vmul.f32 %v2380_v58, %v692_v0 }
 0x2c2   :  { %2381 = vtanh.f32 %v858_v13 }
 0x2cf   :  { %v2382_v62 = vpop.eup %2381 }
 0x2d0   :  { %v861_v3 = vmul.f32 %v2382_v62, %v860_v12 }
 0x2d2   :  { %v863_v5 = vadd.f32 %v862_v17, %v861_v3 }
 0x2d4   :  { %v864_v11 = vmax.f32 %v863_v5, 0.0  ;;  %2106 = vmatmul.mubr.msk.f32.vlgmr.msra.gmra.mxu0 %vm42_vm1, %v863_v5  ;;  %2280 = vmatmul.mubr.msk.f32.vlgmr.msra.gmra.mxu1 %vm42_vm1, %v863_v5 }
 0x2d5   :  { %1071 = vmatpush1.msra.mxu0 %v2613_v38  ;;  %2283 = vmatpush3.msra.mxu1 %v2618_v40 }
 0x2d6   :  { %866 = vst.msk [vmem:[#allocation3 + $0x8] sm:$0xff] %vm42_vm1, %v864_v11  ;;  %1072 = vmatprep.subr.mxu0 %v2625_v42  ;;  %2284 = vmatprep.subr.mxu1 %v2459_v22 }
 0x2d7   :  { %1073 = vmatpush1.msra.mxu0 %v2635_v49  ;;  %2285 = vmatpush3.msra.mxu1 %v2648_v51 }
 0x2d8   :  { %1074 = vmatprep.subr.mxu0 %v2643_v50  ;;  %2286 = vmatprep.subr.mxu1 %v2459_v22 }
 0x2d9   :  { %1075 = vmatpush1.msra.mxu0 %v2655_v52  ;;  %2287 = vmatpush3.msra.mxu1 %v2682_v59 }
 0x2da   :  { %1076 = vmatprep.subr.mxu0 %v2663_v56  ;;  %2288 = vmatprep.subr.mxu1 %v2459_v22 }
 0x2db   :  { %1077 = vmatpush1.msra.mxu0 %v2671_v57  ;;  %1110 = vmatprep.mubr.f32.mxu0 %v2459_v22 }
 0x2dc   :  { %2289 = vmatpush3.msra.mxu1 %v2696_v61  ;;  %2290 = vmatprep.mubr.msk.f32.mxu1 %vm2460_vm2, %v2459_v22 }
 0x2dd   :  { %1242 = vmatprep.subr.mxu0 %v2600_v23  ;;  %2293 = vmatprep.subr.mxu1 %v2459_v22 }
 0x394   :  { %v940_v7 = vpop.f32.mrf.mxu0  ;;  %v1011_v16 = vpop.f32.mrf.mxu1 }
 0x395   :  { %v941_v63 = vadd.f32 %v940_v7, %v2777_v36  ;;  %v1012_v39 = vadd.f32 %v1011_v16, %v2806_v46 }
 0x396   :  { %v942_v0 = vpop.f32.mrf.mxu0  ;;  %v2281_v29 = vpop.f32.mrf.mxu1 }
 0x397   :  { %v1015_v60 = vadd.f32 %v941_v63, %v2759_v21  ;;  %v943_v10 = vadd.f32 %v942_v0, %v2787_v53 }
 0x399   :  { %v2108_v2 = vmul.f32 -1.442695, %v1015_v60  ;;  %v1022_v4 = vadd.f32 %v943_v10, %v2764_v27 }
 0x39b   :  { %2383 = vpow2.f32 %v2108_v2  ;;  %v2109_v6 = vmul.f32 -1.442695, %v1022_v4 }
 0x39d   :  { %2385 = vpow2.f32 %v2109_v6 }
 0x3a8   :  { %v2384_v20 = vpop.eup %2383 }
 0x3a9   :  { %v1019_v26 = vadd.f32 1.0, %v2384_v20 }
 0x3aa   :  { %v2386_v31 = vpop.eup %2385 }
 0x3ab   :  { %2387 = vrcp.f32 %v1019_v26  ;;  %v1026_v33 = vadd.f32 1.0, %v2386_v31 }
 0x3ad   :  { %2389 = vrcp.f32 %v1026_v33 }
 0x3b8   :  { %v2388_v43 = vpop.eup %2387 }
 0x3b9   :  { %v1029_v45 = vmul.f32 %v2388_v43, %v1012_v39 }
 0x3ba   :  { %v2390_v8 = vpop.eup %2389 }
 0x3bb   :  { %v1030_v21 = vadd.f32 %v1029_v45, %v2757_v19  ;;  %v1032_v47 = vsub.f32 1.0, %v2390_v8  ;;  %v1034_v27 = vmul.f32 %v2390_v8, %v863_v5 }
 0x3bd   :  { %2391 = vtanh.f32 %v1030_v21 }
 0x3ca   :  { %v2392_v48 = vpop.eup %2391 }
 0x3cb   :  { %v1033_v55 = vmul.f32 %v2392_v48, %v1032_v47 }
 0x3cd   :  { %v1035_v9 = vadd.f32 %v1034_v27, %v1033_v55 }
 0x3cf   :  { %v1036_v13 = vmax.f32 %v1035_v9, 0.0  ;;  %2110 = vmatmul.mubr.msk.f32.vlgmr.msra.gmra.mxu0 %vm42_vm1, %v1035_v9  ;;  %2291 = vmatmul.mubr.msk.f32.vlgmr.msra.gmra.mxu1 %vm42_vm1, %v1035_v9 }
 0x3d0   :  { %1243 = vmatpush1.msra.mxu0 %v2613_v38  ;;  %2294 = vmatpush3.msra.mxu1 %v2618_v40 }
 0x3d1   :  { %1038 = vst.msk [vmem:[#allocation3 + $0x10] sm:$0xff] %vm42_vm1, %v1036_v13  ;;  %1244 = vmatprep.subr.mxu0 %v2625_v42  ;;  %2295 = vmatprep.subr.mxu1 %v2459_v22 }
 0x3d2   :  { %1245 = vmatpush1.msra.mxu0 %v2635_v49  ;;  %2296 = vmatpush3.msra.mxu1 %v2648_v51 }
 0x3d3   :  { %1246 = vmatprep.subr.mxu0 %v2643_v50  ;;  %2297 = vmatprep.subr.mxu1 %v2459_v22 }
 0x3d4   :  { %1247 = vmatpush1.msra.mxu0 %v2655_v52  ;;  %2298 = vmatpush3.msra.mxu1 %v2682_v59 }
 0x3d5   :  { %1248 = vmatprep.subr.mxu0 %v2663_v56  ;;  %2299 = vmatprep.subr.mxu1 %v2459_v22 }
 0x3d6   :  { %1249 = vmatpush1.msra.mxu0 %v2671_v57  ;;  %1282 = vmatprep.mubr.f32.mxu0 %v2459_v22 }
 0x3d7   :  { %2300 = vmatpush3.msra.mxu1 %v2696_v61  ;;  %2301 = vmatprep.mubr.msk.f32.mxu1 %vm2460_vm2, %v2459_v22 }
 0x3d8   :  { %1414 = vmatprep.subr.mxu0 %v2600_v23  ;;  %2304 = vmatprep.subr.mxu1 %v2459_v22 }
 0x48f   :  { %v1112_v19 = vpop.f32.mrf.mxu0  ;;  %v1183_v58 = vpop.f32.mrf.mxu1 }
 0x490   :  { %v1113_v12 = vadd.f32 %v1112_v19, %v2777_v36  ;;  %v1184_v2 = vadd.f32 %v1183_v58, %v2806_v46 }
 0x491   :  { %v1114_v62 = vpop.f32.mrf.mxu0  ;;  %v2292_v3 = vpop.f32.mrf.mxu1 }
 0x492   :  { %v1187_v17 = vadd.f32 %v1113_v12, %v2772_v32  ;;  %v1115_v11 = vadd.f32 %v1114_v62, %v2787_v53 }
 0x494   :  { %v2112_v5 = vmul.f32 -1.442695, %v1187_v17  ;;  %v1194_v7 = vadd.f32 %v1115_v11, %v2779_v37 }
 0x496   :  { %2393 = vpow2.f32 %v2112_v5  ;;  %v2113_v16 = vmul.f32 -1.442695, %v1194_v7 }
 0x498   :  { %2395 = vpow2.f32 %v2113_v16 }
 0x4a3   :  { %v2394_v63 = vpop.eup %2393 }
 0x4a4   :  { %v1191_v0 = vadd.f32 1.0, %v2394_v63 }
 0x4a5   :  { %v2396_v29 = vpop.eup %2395 }
 0x4a6   :  { %2397 = vrcp.f32 %v1191_v0  ;;  %v1198_v60 = vadd.f32 1.0, %v2396_v29 }
 0x4a8   :  { %2399 = vrcp.f32 %v1198_v60 }
 0x4b3   :  { %v2398_v10 = vpop.eup %2397 }
 0x4b4   :  { %v1201_v4 = vmul.f32 %v2398_v10, %v1184_v2 }
 0x4b5   :  { %v2400_v6 = vpop.eup %2399 }
 0x4b6   :  { %v1202_v32 = vadd.f32 %v1201_v4, %v2752_v15  ;;  %v1204_v20 = vsub.f32 1.0, %v2400_v6  ;;  %v1206_v37 = vmul.f32 %v2400_v6, %v1035_v9 }
 0x4b8   :  { %2401 = vtanh.f32 %v1202_v32 }
 0x4c5   :  { %v2402_v26 = vpop.eup %2401 }
 0x4c6   :  { %v1205_v31 = vmul.f32 %v2402_v26, %v1204_v20 }
 0x4c8   :  { %v1207_v33 = vadd.f32 %v1206_v37, %v1205_v31 }
 0x4ca   :  { %v1208_v39 = vmax.f32 %v1207_v33, 0.0  ;;  %2114 = vmatmul.mubr.msk.f32.vlgmr.msra.gmra.mxu0 %vm42_vm1, %v1207_v33  ;;  %2302 = vmatmul.mubr.msk.f32.vlgmr.msra.gmra.mxu1 %vm42_vm1, %v1207_v33 }
 0x4cb   :  { %1415 = vmatpush1.msra.mxu0 %v2613_v38  ;;  %2305 = vmatpush3.msra.mxu1 %v2618_v40 }
 0x4cc   :  { %1210 = vst.msk [vmem:[#allocation3 + $0x18] sm:$0xff] %vm42_vm1, %v1208_v39  ;;  %1416 = vmatprep.subr.mxu0 %v2625_v42  ;;  %2306 = vmatprep.subr.mxu1 %v2459_v22 }
 0x4cd   :  { %1417 = vmatpush1.msra.mxu0 %v2635_v49  ;;  %2307 = vmatpush3.msra.mxu1 %v2648_v51 }
 0x4ce   :  { %1418 = vmatprep.subr.mxu0 %v2643_v50  ;;  %2308 = vmatprep.subr.mxu1 %v2459_v22 }
 0x4cf   :  { %1419 = vmatpush1.msra.mxu0 %v2655_v52  ;;  %2309 = vmatpush3.msra.mxu1 %v2682_v59 }
 0x4d0   :  { %1420 = vmatprep.subr.mxu0 %v2663_v56  ;;  %2310 = vmatprep.subr.mxu1 %v2459_v22 }
 0x4d1   :  { %1421 = vmatpush1.msra.mxu0 %v2671_v57  ;;  %1454 = vmatprep.mubr.f32.mxu0 %v2459_v22 }
 0x4d2   :  { %2311 = vmatpush3.msra.mxu1 %v2696_v61  ;;  %2312 = vmatprep.mubr.msk.f32.mxu1 %vm2460_vm2, %v2459_v22 }
 0x4d3   :  { %1586 = vmatprep.subr.mxu0 %v2600_v23  ;;  %2315 = vmatprep.subr.mxu1 %v2459_v22 }
 0x58a   :  { %v1284_v15 = vpop.f32.mrf.mxu0  ;;  %v1355_v43 = vpop.f32.mrf.mxu1 }
 0x58b   :  { %v1285_v45 = vadd.f32 %v1284_v15, %v2777_v36  ;;  %v1356_v62 = vadd.f32 %v1355_v43, %v2806_v46 }
 0x58c   :  { %v1286_v21 = vpop.f32.mrf.mxu0  ;;  %v2303_v8 = vpop.f32.mrf.mxu1 }
 0x58d   :  { %v1359_v47 = vadd.f32 %v1285_v45, %v2784_v44  ;;  %v1287_v55 = vadd.f32 %v1286_v21, %v2787_v53 }
 0x58f   :  { %v2116_v48 = vmul.f32 -1.442695, %v1359_v47  ;;  %v1366_v27 = vadd.f32 %v1287_v55, %v2789_v54 }
 0x591   :  { %2403 = vpow2.f32 %v2116_v48  ;;  %v2117_v9 = vmul.f32 -1.442695, %v1366_v27 }
 0x593   :  { %2405 = vpow2.f32 %v2117_v9 }
 0x59e   :  { %v2404_v13 = vpop.eup %2403 }
 0x59f   :  { %v1363_v19 = vadd.f32 1.0, %v2404_v13 }
 0x5a0   :  { %v2406_v58 = vpop.eup %2405 }
 0x5a1   :  { %2407 = vrcp.f32 %v1363_v19  ;;  %v1370_v12 = vadd.f32 1.0, %v2406_v58 }
 0x5a3   :  { %2409 = vrcp.f32 %v1370_v12 }
 0x5ae   :  { %v2408_v3 = vpop.eup %2407 }
 0x5af   :  { %v1373_v17 = vmul.f32 %v2408_v3, %v1356_v62 }
 0x5b0   :  { %v2410_v5 = vpop.eup %2409 }
 0x5b1   :  { %v1374_v44 = vadd.f32 %v1373_v17, %v2770_v30  ;;  %v1376_v11 = vsub.f32 1.0, %v2410_v5  ;;  %v1378_v54 = vmul.f32 %v2410_v5, %v1207_v33  ;;  %v1911_v5 = vld [vmem:[%s3064_s7 + $0x10] sm:$0xff] }
 0x5b3   :  { %2411 = vtanh.f32 %v1374_v44 }
 0x5c0   :  { %v2412_v7 = vpop.eup %2411 }
 0x5c1   :  { %v1377_v16 = vmul.f32 %v2412_v7, %v1376_v11  ;;  %v1910_v7 = vld [vmem:[%s3064_s7 + $0x8] sm:$0xff] }
 0x5c3   :  { %v1379_v63 = vadd.f32 %v1378_v54, %v1377_v16  ;;  %v1909_v16 = vld [vmem:[%s3064_s7] sm:$0xff]  ;;  %v1902_v54 = vld [vmem:[#allocation3 + $0x8] sm:$0xff] }
 0x5c5   :  { %v1380_v0 = vmax.f32 %v1379_v63, 0.0  ;;  %2118 = vmatmul.mubr.msk.f32.vlgmr.msra.gmra.mxu0 %vm42_vm1, %v1379_v63  ;;  %2313 = vmatmul.mubr.msk.f32.vlgmr.msra.gmra.mxu1 %vm42_vm1, %v1379_v63 }
 0x5c6   :  { %1587 = vmatpush1.msra.mxu0 %v2613_v38  ;;  %2316 = vmatpush3.msra.mxu1 %v2618_v40 }
 0x5c7   :  { %1382 = vst.msk [vmem:[#allocation3 + $0x20] sm:$0xff] %vm42_vm1, %v1380_v0  ;;  %1588 = vmatprep.subr.mxu0 %v2625_v42  ;;  %2317 = vmatprep.subr.mxu1 %v2459_v22  ;;  %v1904_v0 = vld [vmem:[#allocation3 + $0x18] sm:$0xff] }
 0x5c8   :  { %1589 = vmatpush1.msra.mxu0 %v2635_v49  ;;  %2318 = vmatpush3.msra.mxu1 %v2648_v51 }
 0x5c9   :  { %1590 = vmatprep.subr.mxu0 %v2643_v50  ;;  %2319 = vmatprep.subr.mxu1 %v2459_v22 }
 0x5ca   :  { %1591 = vmatpush1.msra.mxu0 %v2655_v52  ;;  %2320 = vmatpush3.msra.mxu1 %v2682_v59 }
 0x5cb   :  { %1592 = vmatprep.subr.mxu0 %v2663_v56  ;;  %2321 = vmatprep.subr.mxu1 %v2459_v22 }
 0x5cc   :  { %1593 = vmatpush1.msra.mxu0 %v2671_v57  ;;  %1626 = vmatprep.mubr.f32.mxu0 %v2459_v22 }
 0x5cd   :  { %2322 = vmatpush3.msra.mxu1 %v2696_v61  ;;  %2323 = vmatprep.mubr.msk.f32.mxu1 %vm2460_vm2, %v2459_v22 }
 0x5ce   :  { %1758 = vmatprep.subr.mxu0 %v2600_v23  ;;  %2326 = vmatprep.subr.mxu1 %v2459_v22 }
 0x685   :  { %v1456_v30 = vpop.f32.mrf.mxu0  ;;  %v1527_v29 = vpop.f32.mrf.mxu1 }
 0x686   :  { %v1457_v60 = vadd.f32 %v1456_v30, %v2777_v36  ;;  %v1528_v39 = vadd.f32 %v1527_v29, %v2806_v46  ;;  %v1905_v30 = vld [vmem:[#allocation3 + $0x20] sm:$0xff] }
 0x687   :  { %v1458_v2 = vpop.f32.mrf.mxu0  ;;  %v2314_v10 = vpop.f32.mrf.mxu1 }
 0x688   :  { %v1531_v4 = vadd.f32 %v1457_v60, %v2791_v1  ;;  %v1459_v6 = vadd.f32 %v1458_v2, %v2787_v53 }
 0x68a   :  { %v2120_v32 = vmul.f32 -1.442695, %v1531_v4  ;;  %v1538_v20 = vadd.f32 %v1459_v6, %v2794_v14 }
 0x68c   :  { %2413 = vpow2.f32 %v2120_v32  ;;  %v2121_v26 = vmul.f32 -1.442695, %v1538_v20 }
 0x68e   :  { %2415 = vpow2.f32 %v2121_v26 }
 0x699   :  { %v2414_v31 = vpop.eup %2413 }
 0x69a   :  { %v1535_v23 = vadd.f32 1.0, %v2414_v31 }
 0x69b   :  { %v2416_v37 = vpop.eup %2415 }
 0x69c   :  { %2417 = vrcp.f32 %v1535_v23  ;;  %v1542_v33 = vadd.f32 1.0, %v2416_v37  ;;  %v3011_v23 = vld [vmem:[%s3065_s8] ss:$0 sm:$0xff] }
 0x69e   :  { %2419 = vrcp.f32 %v1542_v33 }
 0x6a9   :  { %v2418_v15 = vpop.eup %2417 }
 0x6aa   :  { %v1545_v43 = vmul.f32 %v2418_v15, %v1528_v39 }
 0x6ab   :  { %v2420_v45 = vpop.eup %2419 }
 0x6ac   :  { %v1546_v1 = vadd.f32 %v1545_v43, %v2762_v25  ;;  %v1548_v21 = vsub.f32 1.0, %v2420_v45  ;;  %v1550_v14 = vmul.f32 %v2420_v45, %v1379_v63  ;;  %v1903_v63 = vld [vmem:[#allocation3 + $0x10] sm:$0xff] }
 0x6ae   :  { %2421 = vtanh.f32 %v1546_v1 }
 0x6bb   :  { %v2422_v8 = vpop.eup %2421 }
 0x6bc   :  { %v1549_v47 = vmul.f32 %v2422_v8, %v1548_v21 }
 0x6be   :  { %v1551_v48 = vadd.f32 %v1550_v14, %v1549_v47 }
 0x6c0   :  { %v1552_v55 = vmax.f32 %v1551_v48, 0.0  ;;  %2122 = vmatmul.mubr.msk.f32.vlgmr.msra.gmra.mxu0 %vm42_vm1, %v1551_v48  ;;  %2324 = vmatmul.mubr.msk.f32.vlgmr.msra.gmra.mxu1 %vm42_vm1, %v1551_v48 }
 0x6c1   :  { %1759 = vmatpush1.msra.mxu0 %v2613_v38  ;;  %2327 = vmatpush3.msra.mxu1 %v2618_v40  ;;  %v1912_v38 = vld [vmem:[%s3064_s7 + $0x18] sm:$0xff] }
 0x6c2   :  { %1554 = vst.msk [vmem:[#allocation3 + $0x28] sm:$0xff] %vm42_vm1, %v1552_v55  ;;  %1760 = vmatprep.subr.mxu0 %v2625_v42  ;;  %2328 = vmatprep.subr.mxu1 %v2459_v22 }
 0x6c3   :  { %1761 = vmatpush1.msra.mxu0 %v2635_v49  ;;  %2329 = vmatpush3.msra.mxu1 %v2648_v51 }
 0x6c4   :  { %1762 = vmatprep.subr.mxu0 %v2643_v50  ;;  %2330 = vmatprep.subr.mxu1 %v2459_v22 }
 0x6c5   :  { %1763 = vmatpush1.msra.mxu0 %v2655_v52  ;;  %2331 = vmatpush3.msra.mxu1 %v2682_v59 }
 0x6c6   :  { %1764 = vmatprep.subr.mxu0 %v2663_v56  ;;  %2332 = vmatprep.subr.mxu1 %v2459_v22 }
 0x6c7   :  { %1765 = vmatpush1.msra.mxu0 %v2671_v57  ;;  %1798 = vmatprep.mubr.f32.mxu0 %v2459_v22 }
 0x6c8   :  { %2333 = vmatpush3.msra.mxu1 %v2696_v61  ;;  %2334 = vmatprep.mubr.msk.f32.mxu1 %vm2460_vm2, %v2459_v22 }
 0x6c9   :  { %2337 = vmatprep.subr.mxu0 %v1912_v38  ;;  %v1906_v29 = vld [vmem:[#allocation3 + $0x28] sm:$0xff] }
 0x780   :  { %v1628_v40 = vpop.f32.mrf.mxu0  ;;  %v1699_v42 = vpop.f32.mrf.mxu1 }
 0x781   :  { %v1629_v49 = vadd.f32 %v1628_v40, %v2777_v36  ;;  %v1700_v13 = vadd.f32 %v1699_v42, %v2806_v46 }
 0x782   :  { %v1630_v50 = vpop.f32.mrf.mxu0  ;;  %v2325_v51 = vpop.f32.mrf.mxu1 }
 0x783   :  { %v1703_v52 = vadd.f32 %v1629_v49, %v2796_v18  ;;  %v1631_v57 = vadd.f32 %v1630_v50, %v2787_v53 }
 0x785   :  { %v2124_v56 = vmul.f32 -1.442695, %v1703_v52  ;;  %v1710_v59 = vadd.f32 %v1631_v57, %v2798_v24 }
 0x787   :  { %2423 = vpow2.f32 %v2124_v56  ;;  %v2125_v22 = vmul.f32 -1.442695, %v1710_v59 }
 0x789   :  { %2425 = vpow2.f32 %v2125_v22 }
 0x794   :  { %v2424_v61 = vpop.eup %2423 }
 0x795   :  { %v1707_v25 = vadd.f32 1.0, %v2424_v61 }
 0x796   :  { %v2426_v27 = vpop.eup %2425 }
 0x797   :  { %2427 = vrcp.f32 %v1707_v25  ;;  %v1714_v9 = vadd.f32 1.0, %v2426_v27 }
 0x799   :  { %2429 = vrcp.f32 %v1714_v9 }
 0x7a4   :  { %v2428_v19 = vpop.eup %2427 }
 0x7a5   :  { %v1717_v58 = vmul.f32 %v2428_v19, %v1700_v13 }
 0x7a6   :  { %v2430_v12 = vpop.eup %2429 }
 0x7a7   :  { %v1718_v18 = vadd.f32 %v1717_v58, %v2782_v41  ;;  %v1720_v62 = vsub.f32 1.0, %v2430_v12  ;;  %v1722_v24 = vmul.f32 %v2430_v12, %v1551_v48  ;;  %v1901_v41 = vld [vmem:[#allocation3] sm:$0xff] }
 0x7a9   :  { %2431 = vtanh.f32 %v1718_v18 }
 0x7b6   :  { %v2432_v3 = vpop.eup %2431 }
 0x7b7   :  { %v1721_v17 = vmul.f32 %v2432_v3, %v1720_v62 }
 0x7b9   :  { %v2981_v44 = vadd.f32 %v1722_v24, %v1721_v17 }
 0x7bb   :  { %v1724_v11 = vmax.f32 %v2981_v44, 0.0  ;;  %2126 = vmatmul.mubr.msk.f32.vlgmr.msra.gmra.mxu0 %vm42_vm1, %v2981_v44  ;;  %2335 = vmatmul.mubr.msk.f32.vlgmr.msra.gmra.mxu1 %vm42_vm1, %v2981_v44 }
 0x7bc   :  { %2338 = vmatpush3.msra.mxu0 %v1912_v38  ;;  %2345 = vmatprep.mubr.msk.f32.mxu0 %vm42_vm1, %v1901_v41 }
 0x7bd   :  { %1726 = vst.msk [vmem:[#allocation3 + $0x30] sm:$0xff] %vm42_vm1, %v1724_v11  ;;  %2339 = vmatprep.subr.mxu0 %v1911_v5 }
 0x7be   :  { %2340 = vmatpush3.msra.mxu0 %v1911_v5 }
 0x7bf   :  { %2341 = vmatprep.subr.mxu0 %v1910_v7 }
 0x7c0   :  { %2342 = vmatpush3.msra.mxu0 %v1910_v7 }
 0x7c1   :  { %2343 = vmatprep.subr.mxu0 %v1909_v16 }
 0x7c2   :  { %2344 = vmatpush3.msra.mxu0 %v1909_v16 }
 0x7c3   :  { %2346 = vmatmul.mubr.msk.f32.vlgmr.msra.gmra.mxu0 %vm42_vm1, %v1902_v54 }
 0x7c4   :  { %2348 = vmatprep.mubr.msk.f32.mxu0 %vm42_vm1, %v1903_v63  ;;  %v1907_v60 = vld [vmem:[#allocation3 + $0x30] sm:$0xff] }
 0x7c7   :  { %2349 = vmatmul.mubr.msk.f32.gmra.mxu0 %vm42_vm1, %v1904_v0 }
 0x7c8   :  { %2351 = vmatprep.mubr.msk.f32.mxu0 %vm42_vm1, %v1905_v30 }
 0x7cb   :  { %2352 = vmatmul.mubr.msk.f32.gmra.mxu0 %vm42_vm1, %v1906_v29 }
 0x7cc   :  { %2354 = vmatprep.mubr.msk.f32.mxu0 %vm42_vm1, %v1907_v60 }
 0x87b   :  { %v1800_v2 = vpop.f32.mrf.mxu0  ;;  %v1871_v10 = vpop.f32.mrf.mxu1 }
 0x87c   :  { %v1801_v4 = vadd.f32 %v1800_v2, %v2777_v36  ;;  %v1872_v56 = vadd.f32 %v1871_v10, %v2806_v46 }
 0x87d   :  { %v1802_v32 = vpop.f32.mrf.mxu0  ;;  %v2336_v6 = vpop.f32.mrf.mxu1 }
 0x87e   :  { %v1875_v20 = vadd.f32 %v1801_v4, %v2800_v28  ;;  %v1803_v26 = vadd.f32 %v1802_v32, %v2787_v53 }
 0x880   :  { %v2128_v31 = vmul.f32 -1.442695, %v1875_v20  ;;  %v1882_v37 = vadd.f32 %v1803_v26, %v2802_v35 }
 0x882   :  { %2433 = vpow2.f32 %v2128_v31  ;;  %v2129_v43 = vmul.f32 -1.442695, %v1882_v37 }
 0x883   :  { %v2347_v33 = vpop.f32.mrf.mxu0 }
 0x884   :  { %v2016_v39 = vadd.f32 %v2347_v33, %v3011_v23 }
 0x885   :  { %v2010_v15 = vpop.f32.mrf.mxu0 }
 0x886   :  { %2435 = vtanh.f32 %v2016_v39  ;;  %v2011_v36 = vadd.f32 %v3011_v23, %v2010_v15 }
 0x887   :  { %v2350_v28 = vpop.f32.mrf.mxu0 }
 0x888   :  { %2437 = vtanh.f32 %v2011_v36  ;;  %v2026_v53 = vadd.f32 %v2350_v28, %v3011_v23 }
 0x889   :  { %v2020_v1 = vpop.f32.mrf.mxu0 }
 0x88a   :  { %2439 = vtanh.f32 %v2026_v53  ;;  %v2021_v45 = vadd.f32 %v3011_v23, %v2020_v1 }
 0x88b   :  { %2441 = vpow2.f32 %v2129_v43  ;;  %v2353_v21 = vpop.f32.mrf.mxu0 }
 0x88c   :  { %2443 = vtanh.f32 %v2021_v45  ;;  %v2036_v35 = vadd.f32 %v2353_v21, %v3011_v23 }
 0x88d   :  { %v2030_v8 = vpop.f32.mrf.mxu0 }
 0x88e   :  { %2445 = vtanh.f32 %v2036_v35  ;;  %v2031_v47 = vadd.f32 %v3011_v23, %v2030_v8 }
 0x88f   :  { %v2434_v14 = vpop.eup %2433 }
 0x890   :  { %v1879_v48 = vadd.f32 1.0, %v2434_v14  ;;  %2447 = vtanh.f32 %v2031_v47 }
 0x892   :  { %2449 = vrcp.f32 %v1879_v48 }
 0x893   :  { %v2436_v55 = vpop.eup %2435 }
 0x894   :  { %2058 = vst [vmem:[%s3066_s10 + $0x8] sm:$0xff] %v2436_v55 }
 0x895   :  { %v2438_v38 = vpop.eup %2437 }
 0x896   :  { %2057 = vst [vmem:[%s3066_s10] sm:$0xff] %v2438_v38 }
 0x897   :  { %v2440_v40 = vpop.eup %2439 }
 0x898   :  { %v2442_v42 = vpop.eup %2441  ;;  %2060 = vst [vmem:[%s3066_s10 + $0x18] sm:$0xff] %v2440_v40 }
 0x899   :  { %v2444_v49 = vpop.eup %2443  ;;  %v1886_v51 = vadd.f32 1.0, %v2442_v42 }
 0x89a   :  { %2059 = vst [vmem:[%s3066_s10 + $0x10] sm:$0xff] %v2444_v49 }
 0x89b   :  { %v2446_v50 = vpop.eup %2445  ;;  %2451 = vrcp.f32 %v1886_v51 }
 0x89c   :  { %2062 = vst [vmem:[%s3066_s10 + $0x28] sm:$0xff] %v2446_v50 }
 0x89d   :  { %v2448_v52 = vpop.eup %2447 }
 0x89e   :  { %2061 = vst [vmem:[%s3066_s10 + $0x20] sm:$0xff] %v2448_v52 }
 0x89f   :  { %v2450_v57 = vpop.eup %2449 }
 0x8a0   :  { %v1889_v59 = vmul.f32 %v2450_v57, %v1872_v56 }
 0x8a2   :  { %v1890_v22 = vadd.f32 %v1889_v59, %v2775_v34 }
 0x8a4   :  { %2453 = vtanh.f32 %v1890_v22 }
 0x8a8   :  { %v2452_v61 = vpop.eup %2451 }
 0x8a9   :  { %v1892_v25 = vsub.f32 1.0, %v2452_v61  ;;  %v1894_v13 = vmul.f32 %v2452_v61, %v2981_v44 }
 0x8b1   :  { %v2454_v27 = vpop.eup %2453 }
 0x8b2   :  { %v1893_v9 = vmul.f32 %v2454_v27, %v1892_v25 }
 0x8b4   :  { %v1895_v19 = vadd.f32 %v1894_v13, %v1893_v9 }
 0x8b6   :  { %v1896_v58 = vmax.f32 %v1895_v19, 0.0  ;;  %1899 = vst.msk [vmem:[#allocation4] sm:$0xff] %vm42_vm1, %v1895_v19  ;;  %1900 = vst.msk [vmem:[%s3067_s11] sm:$0xff] %vm42_vm1, %v1895_v19 }
 0x8b8   :  { %1898 = vst.msk [vmem:[#allocation3 + $0x38] sm:$0xff] %vm42_vm1, %v1896_v58 }
 0x8bf   :  { %v1908_v46 = vld [vmem:[#allocation3 + $0x38] sm:$0xff] }
 0x8c0   :  { %2355 = vmatmul.mubr.msk.f32.gmra.mxu0 %vm42_vm1, %v1908_v46 }
 0x980   :  { %v2356_v34 = vpop.f32.mrf.mxu0 }
 0x981   :  { %v2046_v18 = vadd.f32 %v2356_v34, %v3011_v23 }
 0x982   :  { %v2040_v12 = vpop.f32.mrf.mxu0 }
 0x983   :  { %2455 = vtanh.f32 %v2046_v18  ;;  %v2041_v62 = vadd.f32 %v3011_v23, %v2040_v12 }
 0x985   :  { %2457 = vtanh.f32 %v2041_v62 }
 0x990   :  { %v2456_v3 = vpop.eup %2455 }
 0x991   :  { %2064 = vst [vmem:[%s3066_s10 + $0x38] sm:$0xff] %v2456_v3 }
 0x992   :  { %v2458_v17 = vpop.eup %2457 }
 0x993   :  { %2063 = vst [vmem:[%s3066_s10 + $0x30] sm:$0xff] %v2458_v17 }

</bundles_post_ra>
